<compile_context>
chip_gen: v5e
topology: v5e:2x2
jax: 0.10.0
libtpu: 0.0.40
codegen_flags: <defaults>
</compile_context>

<pallas_src>
import functools

import jax
import jax.numpy as jnp
from jax.experimental import pallas as pl
from jax.experimental.pallas import tpu as pltpu


# ----------------------------- Pallas kernel ------------------------------- #
def lstm_fc_kernel(
    x2d_ref,      # (T*B, I)   time-major input, flattened over (T, B)
    wih0_ref,     # (I, 4H)    layer-0 input->gates
    b0_ref,       # (1, 4H)    layer-0 combined bias (b_ih + b_hh)
    wbig_ref,     # (2H, 8H)   fused recurrent weight [[whh0, wih1],[0, whh1]]
    b1_ref,       # (1, 4H)    layer-1 combined bias
    fw1_ref,      # (H, 16)    fc hidden layer
    fb1_ref,      # (1, 16)
    fw2_ref,      # (16, O)    fc output layer
    fb2_ref,      # (1, O)
    out_ref,      # (B, O)
    *,
    seq_len: int,
    batch: int,
    hidden: int,
):
    T, B, H = seq_len, batch, hidden
    G = 4 * H  # gate width (=128 for H=32 -> exactly one vreg lane-width)

    # ---- hoisted work (outside the serial recurrence) ----------------------
    # Layer-0 input projection for ALL timesteps in one matmul; b0 folded in.
    x_proj = (
        jnp.dot(x2d_ref[...], wih0_ref[...], preferred_element_type=jnp.float32)
        + b0_ref[...]
    )                                                   # (T*B, 4H)
    wbig = wbig_ref[...]                                # (2H, 8H)
    b1_b = jnp.broadcast_to(b1_ref[...], (B, G))        # hoisted bias broadcast

    def cell_update(gates, c):
        # Full-width activations: 2 EUP pushes over the whole (B, 4H) tile,
        # then static 32-lane slices (gate order i, f, g, o as in nn.LSTM).
        sig = jax.nn.sigmoid(gates)
        th = jnp.tanh(gates)
        i_g = sig[:, 0 * H:1 * H]
        f_g = sig[:, 1 * H:2 * H]
        g_g = th[:, 2 * H:3 * H]
        o_g = sig[:, 3 * H:4 * H]
        c_new = f_g * c + i_g * g_g
        h_new = o_g * jnp.tanh(c_new)
        return h_new, c_new

    zeros = jnp.zeros((B, H), jnp.float32)
    h0, c0, h1, c1 = zeros, zeros, zeros, zeros

    # Fully-unrolled skewed schedule: iteration t issues ONE fused matmul and
    # retires layer-0 step t plus layer-1 step t-1 (both read h0(t-1), h1(t-2)).
    for t in range(T):
        hcat = jnp.concatenate([h0, h1], axis=1)                  # (B, 2H)
        gboth = jnp.dot(hcat, wbig, preferred_element_type=jnp.float32)  # (B, 8H)
        if t > 0:
            # layer-1, step t-1
            # TODO(synk): inter-layer dropout (p=0.2) skipped — inference semantics.
            h1, c1 = cell_update(gboth[:, G:] + b1_b, c1)
        # layer-0, step t
        gates0 = gboth[:, :G] + x_proj[t * B:(t + 1) * B, :]
        h0, c0 = cell_update(gates0, c0)

    # Epilogue: layer-1 for the final step T-1.
    hcat = jnp.concatenate([h0, h1], axis=1)
    gboth = jnp.dot(hcat, wbig, preferred_element_type=jnp.float32)
    h1, c1 = cell_update(gboth[:, G:] + b1_b, c1)

    # FC head: Linear(H,16) -> ReLU -> (Dropout: identity) -> Linear(16,O)
    hidden_act = jnp.maximum(
        jnp.dot(h1, fw1_ref[...], preferred_element_type=jnp.float32)
        + fb1_ref[...],
        0.0,
    )
    out = (
        jnp.dot(hidden_act, fw2_ref[...], preferred_element_type=jnp.float32)
        + fb2_ref[...]
    )
    out_ref[...] = out.astype(out_ref.dtype)


# ------------------------------ JAX wrapper -------------------------------- #
def lstm_model_forward(x, params):
    """x: (B, T, I) batch-first float32.  Returns (B, output_size)."""
    B, T, I = x.shape
    H = params["whh0"].shape[0]
    O = params["fb2"].shape[-1]

    # time-major, flattened to (T*B, I) so the layer-0 input projection can be
    # hoisted out of the recurrence as a single matmul.
    x2d = jnp.transpose(x, (1, 0, 2)).reshape(T * B, I)

    # Fused recurrent weight: [h0 | h1] @ Wbig = [h0@whh0 | h0@wih1 + h1@whh1]
    wbig = jnp.concatenate(
        [
            jnp.concatenate([params["whh0"], params["wih1"]], axis=1),
            jnp.concatenate(
                [jnp.zeros((H, 4 * H), jnp.float32), params["whh1"]], axis=1
            ),
        ],
        axis=0,
    )  # (2H, 8H)

    args = (
        x2d,
        params["wih0"], params["b0"],
        wbig, params["b1"],
        params["fw1"], params["fb1"], params["fw2"], params["fb2"],
    )
    vmem = pl.BlockSpec(memory_space=pltpu.MemorySpace.VMEM)
    kernel = functools.partial(lstm_fc_kernel, seq_len=T, batch=B, hidden=H)
    # TODO(synk): for large B on v7x, add a "parallel" batch grid axis (2 TCs);
    # at B=2 a single gridless whole-VMEM call is the right shape.
    return pl.pallas_call(
        kernel,
        out_shape=jax.ShapeDtypeStruct((B, O), jnp.float32),
        in_specs=[vmem] * len(args),
        out_specs=vmem,
    )(*args)


# --------------------------- pure-JAX reference ----------------------------- #
def lstm_model_reference(x, params):
    B, T, I = x.shape
    H = params["whh0"].shape[0]

    def cell(x_t, h, c, wih, whh, b):
        g = x_t @ wih + h @ whh + b
        i_g = jax.nn.sigmoid(g[:, 0 * H:1 * H])
        f_g = jax.nn.sigmoid(g[:, 1 * H:2 * H])
        g_g = jnp.tanh(g[:, 2 * H:3 * H])
        o_g = jax.nn.sigmoid(g[:, 3 * H:4 * H])
        c = f_g * c + i_g * g_g
        return o_g * jnp.tanh(c), c

    h0 = c0 = h1 = c1 = jnp.zeros((B, H), jnp.float32)
    for t in range(T):
        h0, c0 = cell(x[:, t, :], h0, c0, params["wih0"], params["whh0"], params["b0"])
        h1, c1 = cell(h0, h1, c1, params["wih1"], params["whh1"], params["b1"])
    hid = jnp.maximum(h1 @ params["fw1"] + params["fb1"], 0.0)
    return hid @ params["fw2"] + params["fb2"]


# ------------------------------ param init --------------------------------- #
def init_params(key, input_size, hidden_size, output_size):
    H = hidden_size
    bound = 1.0 / jnp.sqrt(jnp.float32(H))
    keys = jax.random.split(key, 12)

    def u(k, shape):
        return jax.random.uniform(k, shape, jnp.float32, -bound, bound)

    params = {
        # layer 0
        "wih0": u(keys[0], (input_size, 4 * H)),
        "whh0": u(keys[1], (H, 4 * H)),
        "b0": u(keys[2], (1, 4 * H)) + u(keys[3], (1, 4 * H)),  # b_ih + b_hh
        # layer 1
        "wih1": u(keys[4], (H, 4 * H)),
        "whh1": u(keys[5], (H, 4 * H)),
        "b1": u(keys[6], (1, 4 * H)) + u(keys[7], (1, 4 * H)),
        # fc head
        "fw1": u(keys[8], (H, 16)),
        "fb1": u(keys[9], (1, 16)),
        "fw2": u(keys[10], (16, output_size)),
        "fb2": u(keys[11], (1, output_size)),
    }
    return params


if __name__ == "__main__":
    input_size, hidden_size, num_layers, output_size = 4, 32, 2, 4
    batch, seq = 2, 8

    key = jax.random.PRNGKey(0)
    k_x, k_p = jax.random.split(key)
    x = jax.random.normal(k_x, (batch, seq, input_size), jnp.float32)
    params = init_params(k_p, input_size, hidden_size, output_size)

    out = jax.block_until_ready(lstm_model_forward(x, params))
    ref = lstm_model_reference(x, params)

    assert out.shape == (batch, output_size)
    assert jnp.allclose(out, ref, atol=1e-4, rtol=1e-4), (out, ref)
    print("KERNEL_OK")
</pallas_src>

<mosaic_0001>
module attributes {stable_mosaic.version = 11 : i64} {
  func.func @lstm_fc_kernel(%arg0: memref<16x4xf32, #tpu.memory_space<vmem>>, %arg1: memref<4x128xf32, #tpu.memory_space<vmem>>, %arg2: memref<1x128xf32, #tpu.memory_space<vmem>>, %arg3: memref<64x256xf32, #tpu.memory_space<vmem>>, %arg4: memref<1x128xf32, #tpu.memory_space<vmem>>, %arg5: memref<32x16xf32, #tpu.memory_space<vmem>>, %arg6: memref<1x16xf32, #tpu.memory_space<vmem>>, %arg7: memref<16x4xf32, #tpu.memory_space<vmem>>, %arg8: memref<1x4xf32, #tpu.memory_space<vmem>>, %arg9: memref<2x4xf32, #tpu.memory_space<vmem>>) attributes {dimension_semantics = [], scalar_prefetch = 0 : i64, scratch_operands = 0 : i64, tpu.core_type = #tpu.core_type<tc>} {
    %c0 = arith.constant 0 : index
    %c0_0 = arith.constant 0 : index
    %0 = vector.load %arg0[%c0, %c0_0] : memref<16x4xf32, #tpu.memory_space<vmem>>, vector<16x4xf32>
    %c0_1 = arith.constant 0 : index
    %c0_2 = arith.constant 0 : index
    %1 = vector.load %arg1[%c0_1, %c0_2] : memref<4x128xf32, #tpu.memory_space<vmem>>, vector<4x128xf32>
    %cst = arith.constant dense<0.000000e+00> : vector<16x128xf32>
    %2 = tpu.matmul %0, %1, %cst {dimension_numbers = #tpu.dot_dimension_numbers<[1], [0], [0], [1], [0, 0, 1, 1], [], []>} : vector<16x4xf32>, vector<4x128xf32>, vector<16x128xf32> -> vector<16x128xf32>
    %c0_3 = arith.constant 0 : index
    %c0_4 = arith.constant 0 : index
    %3 = vector.load %arg2[%c0_3, %c0_4] : memref<1x128xf32, #tpu.memory_space<vmem>>, vector<1x128xf32>
    %4 = vector.broadcast %3 : vector<1x128xf32> to vector<16x128xf32>
    %5 = arith.addf %2, %4 : vector<16x128xf32>
    %c0_5 = arith.constant 0 : index
    %c0_6 = arith.constant 0 : index
    %6 = vector.load %arg3[%c0_5, %c0_6] : memref<64x256xf32, #tpu.memory_space<vmem>>, vector<64x256xf32>
    %c0_7 = arith.constant 0 : index
    %c0_8 = arith.constant 0 : index
    %7 = vector.load %arg4[%c0_7, %c0_8] : memref<1x128xf32, #tpu.memory_space<vmem>>, vector<1x128xf32>
    %8 = vector.shape_cast %7 : vector<1x128xf32> to vector<1x128xf32>
    %9 = vector.broadcast %8 : vector<1x128xf32> to vector<2x128xf32>
    %cst_9 = arith.constant 0.000000e+00 : f32
    %10 = vector.broadcast %cst_9 : f32 to vector<2x32xf32>
    %11 = tpu.concatenate %10, %10 in 1 : vector<2x32xf32>, vector<2x32xf32> -> vector<2x64xf32>
    %cst_10 = arith.constant dense<0.000000e+00> : vector<2x256xf32>
    %12 = tpu.matmul %11, %6, %cst_10 {dimension_numbers = #tpu.dot_dimension_numbers<[1], [0], [0], [1], [0, 0, 1, 1], [], []>} : vector<2x64xf32>, vector<64x256xf32>, vector<2x256xf32> -> vector<2x256xf32>
    %13 = vector.extract_strided_slice %12 {offsets = [0, 0], sizes = [2, 128], strides = [1, 1]} : vector<2x256xf32> to vector<2x128xf32>
    %14 = vector.extract_strided_slice %5 {offsets = [0, 0], sizes = [2, 128], strides = [1, 1]} : vector<16x128xf32> to vector<2x128xf32>
    %15 = arith.addf %13, %14 : vector<2x128xf32>
    %16 = arith.negf %15 : vector<2x128xf32>
    %17 = math.exp %16 : vector<2x128xf32>
    %cst_11 = arith.constant 1.000000e+00 : f32
    %18 = vector.broadcast %cst_11 : f32 to vector<2x128xf32>
    %19 = arith.addf %18, %17 : vector<2x128xf32>
    %20 = arith.divf %18, %19 : vector<2x128xf32>
    %21 = math.tanh %15 : vector<2x128xf32>
    %22 = vector.extract_strided_slice %20 {offsets = [0, 0], sizes = [2, 32], strides = [1, 1]} : vector<2x128xf32> to vector<2x32xf32>
    %23 = vector.extract_strided_slice %20 {offsets = [0, 32], sizes = [2, 32], strides = [1, 1]} : vector<2x128xf32> to vector<2x32xf32>
    %24 = vector.extract_strided_slice %21 {offsets = [0, 64], sizes = [2, 32], strides = [1, 1]} : vector<2x128xf32> to vector<2x32xf32>
    %25 = vector.extract_strided_slice %20 {offsets = [0, 96], sizes = [2, 32], strides = [1, 1]} : vector<2x128xf32> to vector<2x32xf32>
    %26 = arith.mulf %23, %10 : vector<2x32xf32>
    %27 = arith.mulf %22, %24 : vector<2x32xf32>
    %28 = arith.addf %26, %27 : vector<2x32xf32>
    %29 = math.tanh %28 : vector<2x32xf32>
    %30 = arith.mulf %25, %29 : vector<2x32xf32>
    %31 = tpu.concatenate %30, %10 in 1 : vector<2x32xf32>, vector<2x32xf32> -> vector<2x64xf32>
    %cst_12 = arith.constant dense<0.000000e+00> : vector<2x256xf32>
    %32 = tpu.matmul %31, %6, %cst_12 {dimension_numbers = #tpu.dot_dimension_numbers<[1], [0], [0], [1], [0, 0, 1, 1], [], []>} : vector<2x64xf32>, vector<64x256xf32>, vector<2x256xf32> -> vector<2x256xf32>
    %33 = vector.extract_strided_slice %32 {offsets = [0, 128], sizes = [2, 128], strides = [1, 1]} : vector<2x256xf32> to vector<2x128xf32>
    %34 = arith.addf %33, %9 : vector<2x128xf32>
    %35 = arith.negf %34 : vector<2x128xf32>
    %36 = math.exp %35 : vector<2x128xf32>
    %cst_13 = arith.constant 1.000000e+00 : f32
    %37 = vector.broadcast %cst_13 : f32 to vector<2x128xf32>
    %38 = arith.addf %37, %36 : vector<2x128xf32>
    %39 = arith.divf %37, %38 : vector<2x128xf32>
    %40 = math.tanh %34 : vector<2x128xf32>
    %41 = vector.extract_strided_slice %39 {offsets = [0, 0], sizes = [2, 32], strides = [1, 1]} : vector<2x128xf32> to vector<2x32xf32>
    %42 = vector.extract_strided_slice %39 {offsets = [0, 32], sizes = [2, 32], strides = [1, 1]} : vector<2x128xf32> to vector<2x32xf32>
    %43 = vector.extract_strided_slice %40 {offsets = [0, 64], sizes = [2, 32], strides = [1, 1]} : vector<2x128xf32> to vector<2x32xf32>
    %44 = vector.extract_strided_slice %39 {offsets = [0, 96], sizes = [2, 32], strides = [1, 1]} : vector<2x128xf32> to vector<2x32xf32>
    %45 = arith.mulf %42, %10 : vector<2x32xf32>
    %46 = arith.mulf %41, %43 : vector<2x32xf32>
    %47 = arith.addf %45, %46 : vector<2x32xf32>
    %48 = math.tanh %47 : vector<2x32xf32>
    %49 = arith.mulf %44, %48 : vector<2x32xf32>
    %50 = vector.extract_strided_slice %32 {offsets = [0, 0], sizes = [2, 128], strides = [1, 1]} : vector<2x256xf32> to vector<2x128xf32>
    %51 = vector.extract_strided_slice %5 {offsets = [2, 0], sizes = [2, 128], strides = [1, 1]} : vector<16x128xf32> to vector<2x128xf32>
    %52 = arith.addf %50, %51 : vector<2x128xf32>
    %53 = arith.negf %52 : vector<2x128xf32>
    %54 = math.exp %53 : vector<2x128xf32>
    %cst_14 = arith.constant 1.000000e+00 : f32
    %55 = vector.broadcast %cst_14 : f32 to vector<2x128xf32>
    %56 = arith.addf %55, %54 : vector<2x128xf32>
    %57 = arith.divf %55, %56 : vector<2x128xf32>
    %58 = math.tanh %52 : vector<2x128xf32>
    %59 = vector.extract_strided_slice %57 {offsets = [0, 0], sizes = [2, 32], strides = [1, 1]} : vector<2x128xf32> to vector<2x32xf32>
    %60 = vector.extract_strided_slice %57 {offsets = [0, 32], sizes = [2, 32], strides = [1, 1]} : vector<2x128xf32> to vector<2x32xf32>
    %61 = vector.extract_strided_slice %58 {offsets = [0, 64], sizes = [2, 32], strides = [1, 1]} : vector<2x128xf32> to vector<2x32xf32>
    %62 = vector.extract_strided_slice %57 {offsets = [0, 96], sizes = [2, 32], strides = [1, 1]} : vector<2x128xf32> to vector<2x32xf32>
    %63 = arith.mulf %60, %28 : vector<2x32xf32>
    %64 = arith.mulf %59, %61 : vector<2x32xf32>
    %65 = arith.addf %63, %64 : vector<2x32xf32>
    %66 = math.tanh %65 : vector<2x32xf32>
    %67 = arith.mulf %62, %66 : vector<2x32xf32>
    %68 = tpu.concatenate %67, %49 in 1 : vector<2x32xf32>, vector<2x32xf32> -> vector<2x64xf32>
    %cst_15 = arith.constant dense<0.000000e+00> : vector<2x256xf32>
    %69 = tpu.matmul %68, %6, %cst_15 {dimension_numbers = #tpu.dot_dimension_numbers<[1], [0], [0], [1], [0, 0, 1, 1], [], []>} : vector<2x64xf32>, vector<64x256xf32>, vector<2x256xf32> -> vector<2x256xf32>
    %70 = vector.extract_strided_slice %69 {offsets = [0, 128], sizes = [2, 128], strides = [1, 1]} : vector<2x256xf32> to vector<2x128xf32>
    %71 = arith.addf %70, %9 : vector<2x128xf32>
    %72 = arith.negf %71 : vector<2x128xf32>
    %73 = math.exp %72 : vector<2x128xf32>
    %cst_16 = arith.constant 1.000000e+00 : f32
    %74 = vector.broadcast %cst_16 : f32 to vector<2x128xf32>
    %75 = arith.addf %74, %73 : vector<2x128xf32>
    %76 = arith.divf %74, %75 : vector<2x128xf32>
    %77 = math.tanh %71 : vector<2x128xf32>
    %78 = vector.extract_strided_slice %76 {offsets = [0, 0], sizes = [2, 32], strides = [1, 1]} : vector<2x128xf32> to vector<2x32xf32>
    %79 = vector.extract_strided_slice %76 {offsets = [0, 32], sizes = [2, 32], strides = [1, 1]} : vector<2x128xf32> to vector<2x32xf32>
    %80 = vector.extract_strided_slice %77 {offsets = [0, 64], sizes = [2, 32], strides = [1, 1]} : vector<2x128xf32> to vector<2x32xf32>
    %81 = vector.extract_strided_slice %76 {offsets = [0, 96], sizes = [2, 32], strides = [1, 1]} : vector<2x128xf32> to vector<2x32xf32>
    %82 = arith.mulf %79, %47 : vector<2x32xf32>
    %83 = arith.mulf %78, %80 : vector<2x32xf32>
    %84 = arith.addf %82, %83 : vector<2x32xf32>
    %85 = math.tanh %84 : vector<2x32xf32>
    %86 = arith.mulf %81, %85 : vector<2x32xf32>
    %87 = vector.extract_strided_slice %69 {offsets = [0, 0], sizes = [2, 128], strides = [1, 1]} : vector<2x256xf32> to vector<2x128xf32>
    %88 = vector.extract_strided_slice %5 {offsets = [4, 0], sizes = [2, 128], strides = [1, 1]} : vector<16x128xf32> to vector<2x128xf32>
    %89 = arith.addf %87, %88 : vector<2x128xf32>
    %90 = arith.negf %89 : vector<2x128xf32>
    %91 = math.exp %90 : vector<2x128xf32>
    %cst_17 = arith.constant 1.000000e+00 : f32
    %92 = vector.broadcast %cst_17 : f32 to vector<2x128xf32>
    %93 = arith.addf %92, %91 : vector<2x128xf32>
    %94 = arith.divf %92, %93 : vector<2x128xf32>
    %95 = math.tanh %89 : vector<2x128xf32>
    %96 = vector.extract_strided_slice %94 {offsets = [0, 0], sizes = [2, 32], strides = [1, 1]} : vector<2x128xf32> to vector<2x32xf32>
    %97 = vector.extract_strided_slice %94 {offsets = [0, 32], sizes = [2, 32], strides = [1, 1]} : vector<2x128xf32> to vector<2x32xf32>
    %98 = vector.extract_strided_slice %95 {offsets = [0, 64], sizes = [2, 32], strides = [1, 1]} : vector<2x128xf32> to vector<2x32xf32>
    %99 = vector.extract_strided_slice %94 {offsets = [0, 96], sizes = [2, 32], strides = [1, 1]} : vector<2x128xf32> to vector<2x32xf32>
    %100 = arith.mulf %97, %65 : vector<2x32xf32>
    %101 = arith.mulf %96, %98 : vector<2x32xf32>
    %102 = arith.addf %100, %101 : vector<2x32xf32>
    %103 = math.tanh %102 : vector<2x32xf32>
    %104 = arith.mulf %99, %103 : vector<2x32xf32>
    %105 = tpu.concatenate %104, %86 in 1 : vector<2x32xf32>, vector<2x32xf32> -> vector<2x64xf32>
    %cst_18 = arith.constant dense<0.000000e+00> : vector<2x256xf32>
    %106 = tpu.matmul %105, %6, %cst_18 {dimension_numbers = #tpu.dot_dimension_numbers<[1], [0], [0], [1], [0, 0, 1, 1], [], []>} : vector<2x64xf32>, vector<64x256xf32>, vector<2x256xf32> -> vector<2x256xf32>
    %107 = vector.extract_strided_slice %106 {offsets = [0, 128], sizes = [2, 128], strides = [1, 1]} : vector<2x256xf32> to vector<2x128xf32>
    %108 = arith.addf %107, %9 : vector<2x128xf32>
    %109 = arith.negf %108 : vector<2x128xf32>
    %110 = math.exp %109 : vector<2x128xf32>
    %cst_19 = arith.constant 1.000000e+00 : f32
    %111 = vector.broadcast %cst_19 : f32 to vector<2x128xf32>
    %112 = arith.addf %111, %110 : vector<2x128xf32>
    %113 = arith.divf %111, %112 : vector<2x128xf32>
    %114 = math.tanh %108 : vector<2x128xf32>
    %115 = vector.extract_strided_slice %113 {offsets = [0, 0], sizes = [2, 32], strides = [1, 1]} : vector<2x128xf32> to vector<2x32xf32>
    %116 = vector.extract_strided_slice %113 {offsets = [0, 32], sizes = [2, 32], strides = [1, 1]} : vector<2x128xf32> to vector<2x32xf32>
    %117 = vector.extract_strided_slice %114 {offsets = [0, 64], sizes = [2, 32], strides = [1, 1]} : vector<2x128xf32> to vector<2x32xf32>
    %118 = vector.extract_strided_slice %113 {offsets = [0, 96], sizes = [2, 32], strides = [1, 1]} : vector<2x128xf32> to vector<2x32xf32>
    %119 = arith.mulf %116, %84 : vector<2x32xf32>
    %120 = arith.mulf %115, %117 : vector<2x32xf32>
    %121 = arith.addf %119, %120 : vector<2x32xf32>
    %122 = math.tanh %121 : vector<2x32xf32>
    %123 = arith.mulf %118, %122 : vector<2x32xf32>
    %124 = vector.extract_strided_slice %106 {offsets = [0, 0], sizes = [2, 128], strides = [1, 1]} : vector<2x256xf32> to vector<2x128xf32>
    %125 = vector.extract_strided_slice %5 {offsets = [6, 0], sizes = [2, 128], strides = [1, 1]} : vector<16x128xf32> to vector<2x128xf32>
    %126 = arith.addf %124, %125 : vector<2x128xf32>
    %127 = arith.negf %126 : vector<2x128xf32>
    %128 = math.exp %127 : vector<2x128xf32>
    %cst_20 = arith.constant 1.000000e+00 : f32
    %129 = vector.broadcast %cst_20 : f32 to vector<2x128xf32>
    %130 = arith.addf %129, %128 : vector<2x128xf32>
    %131 = arith.divf %129, %130 : vector<2x128xf32>
    %132 = math.tanh %126 : vector<2x128xf32>
    %133 = vector.extract_strided_slice %131 {offsets = [0, 0], sizes = [2, 32], strides = [1, 1]} : vector<2x128xf32> to vector<2x32xf32>
    %134 = vector.extract_strided_slice %131 {offsets = [0, 32], sizes = [2, 32], strides = [1, 1]} : vector<2x128xf32> to vector<2x32xf32>
    %135 = vector.extract_strided_slice %132 {offsets = [0, 64], sizes = [2, 32], strides = [1, 1]} : vector<2x128xf32> to vector<2x32xf32>
    %136 = vector.extract_strided_slice %131 {offsets = [0, 96], sizes = [2, 32], strides = [1, 1]} : vector<2x128xf32> to vector<2x32xf32>
    %137 = arith.mulf %134, %102 : vector<2x32xf32>
    %138 = arith.mulf %133, %135 : vector<2x32xf32>
    %139 = arith.addf %137, %138 : vector<2x32xf32>
    %140 = math.tanh %139 : vector<2x32xf32>
    %141 = arith.mulf %136, %140 : vector<2x32xf32>
    %142 = tpu.concatenate %141, %123 in 1 : vector<2x32xf32>, vector<2x32xf32> -> vector<2x64xf32>
    %cst_21 = arith.constant dense<0.000000e+00> : vector<2x256xf32>
    %143 = tpu.matmul %142, %6, %cst_21 {dimension_numbers = #tpu.dot_dimension_numbers<[1], [0], [0], [1], [0, 0, 1, 1], [], []>} : vector<2x64xf32>, vector<64x256xf32>, vector<2x256xf32> -> vector<2x256xf32>
    %144 = vector.extract_strided_slice %143 {offsets = [0, 128], sizes = [2, 128], strides = [1, 1]} : vector<2x256xf32> to vector<2x128xf32>
    %145 = arith.addf %144, %9 : vector<2x128xf32>
    %146 = arith.negf %145 : vector<2x128xf32>
    %147 = math.exp %146 : vector<2x128xf32>
    %cst_22 = arith.constant 1.000000e+00 : f32
    %148 = vector.broadcast %cst_22 : f32 to vector<2x128xf32>
    %149 = arith.addf %148, %147 : vector<2x128xf32>
    %150 = arith.divf %148, %149 : vector<2x128xf32>
    %151 = math.tanh %145 : vector<2x128xf32>
    %152 = vector.extract_strided_slice %150 {offsets = [0, 0], sizes = [2, 32], strides = [1, 1]} : vector<2x128xf32> to vector<2x32xf32>
    %153 = vector.extract_strided_slice %150 {offsets = [0, 32], sizes = [2, 32], strides = [1, 1]} : vector<2x128xf32> to vector<2x32xf32>
    %154 = vector.extract_strided_slice %151 {offsets = [0, 64], sizes = [2, 32], strides = [1, 1]} : vector<2x128xf32> to vector<2x32xf32>
    %155 = vector.extract_strided_slice %150 {offsets = [0, 96], sizes = [2, 32], strides = [1, 1]} : vector<2x128xf32> to vector<2x32xf32>
    %156 = arith.mulf %153, %121 : vector<2x32xf32>
    %157 = arith.mulf %152, %154 : vector<2x32xf32>
    %158 = arith.addf %156, %157 : vector<2x32xf32>
    %159 = math.tanh %158 : vector<2x32xf32>
    %160 = arith.mulf %155, %159 : vector<2x32xf32>
    %161 = vector.extract_strided_slice %143 {offsets = [0, 0], sizes = [2, 128], strides = [1, 1]} : vector<2x256xf32> to vector<2x128xf32>
    %162 = vector.extract_strided_slice %5 {offsets = [8, 0], sizes = [2, 128], strides = [1, 1]} : vector<16x128xf32> to vector<2x128xf32>
    %163 = arith.addf %161, %162 : vector<2x128xf32>
    %164 = arith.negf %163 : vector<2x128xf32>
    %165 = math.exp %164 : vector<2x128xf32>
    %cst_23 = arith.constant 1.000000e+00 : f32
    %166 = vector.broadcast %cst_23 : f32 to vector<2x128xf32>
    %167 = arith.addf %166, %165 : vector<2x128xf32>
    %168 = arith.divf %166, %167 : vector<2x128xf32>
    %169 = math.tanh %163 : vector<2x128xf32>
    %170 = vector.extract_strided_slice %168 {offsets = [0, 0], sizes = [2, 32], strides = [1, 1]} : vector<2x128xf32> to vector<2x32xf32>
    %171 = vector.extract_strided_slice %168 {offsets = [0, 32], sizes = [2, 32], strides = [1, 1]} : vector<2x128xf32> to vector<2x32xf32>
    %172 = vector.extract_strided_slice %169 {offsets = [0, 64], sizes = [2, 32], strides = [1, 1]} : vector<2x128xf32> to vector<2x32xf32>
    %173 = vector.extract_strided_slice %168 {offsets = [0, 96], sizes = [2, 32], strides = [1, 1]} : vector<2x128xf32> to vector<2x32xf32>
    %174 = arith.mulf %171, %139 : vector<2x32xf32>
    %175 = arith.mulf %170, %172 : vector<2x32xf32>
    %176 = arith.addf %174, %175 : vector<2x32xf32>
    %177 = math.tanh %176 : vector<2x32xf32>
    %178 = arith.mulf %173, %177 : vector<2x32xf32>
    %179 = tpu.concatenate %178, %160 in 1 : vector<2x32xf32>, vector<2x32xf32> -> vector<2x64xf32>
    %cst_24 = arith.constant dense<0.000000e+00> : vector<2x256xf32>
    %180 = tpu.matmul %179, %6, %cst_24 {dimension_numbers = #tpu.dot_dimension_numbers<[1], [0], [0], [1], [0, 0, 1, 1], [], []>} : vector<2x64xf32>, vector<64x256xf32>, vector<2x256xf32> -> vector<2x256xf32>
    %181 = vector.extract_strided_slice %180 {offsets = [0, 128], sizes = [2, 128], strides = [1, 1]} : vector<2x256xf32> to vector<2x128xf32>
    %182 = arith.addf %181, %9 : vector<2x128xf32>
    %183 = arith.negf %182 : vector<2x128xf32>
    %184 = math.exp %183 : vector<2x128xf32>
    %cst_25 = arith.constant 1.000000e+00 : f32
    %185 = vector.broadcast %cst_25 : f32 to vector<2x128xf32>
    %186 = arith.addf %185, %184 : vector<2x128xf32>
    %187 = arith.divf %185, %186 : vector<2x128xf32>
    %188 = math.tanh %182 : vector<2x128xf32>
    %189 = vector.extract_strided_slice %187 {offsets = [0, 0], sizes = [2, 32], strides = [1, 1]} : vector<2x128xf32> to vector<2x32xf32>
    %190 = vector.extract_strided_slice %187 {offsets = [0, 32], sizes = [2, 32], strides = [1, 1]} : vector<2x128xf32> to vector<2x32xf32>
    %191 = vector.extract_strided_slice %188 {offsets = [0, 64], sizes = [2, 32], strides = [1, 1]} : vector<2x128xf32> to vector<2x32xf32>
    %192 = vector.extract_strided_slice %187 {offsets = [0, 96], sizes = [2, 32], strides = [1, 1]} : vector<2x128xf32> to vector<2x32xf32>
    %193 = arith.mulf %190, %158 : vector<2x32xf32>
    %194 = arith.mulf %189, %191 : vector<2x32xf32>
    %195 = arith.addf %193, %194 : vector<2x32xf32>
    %196 = math.tanh %195 : vector<2x32xf32>
    %197 = arith.mulf %192, %196 : vector<2x32xf32>
    %198 = vector.extract_strided_slice %180 {offsets = [0, 0], sizes = [2, 128], strides = [1, 1]} : vector<2x256xf32> to vector<2x128xf32>
    %199 = vector.extract_strided_slice %5 {offsets = [10, 0], sizes = [2, 128], strides = [1, 1]} : vector<16x128xf32> to vector<2x128xf32>
    %200 = arith.addf %198, %199 : vector<2x128xf32>
    %201 = arith.negf %200 : vector<2x128xf32>
    %202 = math.exp %201 : vector<2x128xf32>
    %cst_26 = arith.constant 1.000000e+00 : f32
    %203 = vector.broadcast %cst_26 : f32 to vector<2x128xf32>
    %204 = arith.addf %203, %202 : vector<2x128xf32>
    %205 = arith.divf %203, %204 : vector<2x128xf32>
    %206 = math.tanh %200 : vector<2x128xf32>
    %207 = vector.extract_strided_slice %205 {offsets = [0, 0], sizes = [2, 32], strides = [1, 1]} : vector<2x128xf32> to vector<2x32xf32>
    %208 = vector.extract_strided_slice %205 {offsets = [0, 32], sizes = [2, 32], strides = [1, 1]} : vector<2x128xf32> to vector<2x32xf32>
    %209 = vector.extract_strided_slice %206 {offsets = [0, 64], sizes = [2, 32], strides = [1, 1]} : vector<2x128xf32> to vector<2x32xf32>
    %210 = vector.extract_strided_slice %205 {offsets = [0, 96], sizes = [2, 32], strides = [1, 1]} : vector<2x128xf32> to vector<2x32xf32>
    %211 = arith.mulf %208, %176 : vector<2x32xf32>
    %212 = arith.mulf %207, %209 : vector<2x32xf32>
    %213 = arith.addf %211, %212 : vector<2x32xf32>
    %214 = math.tanh %213 : vector<2x32xf32>
    %215 = arith.mulf %210, %214 : vector<2x32xf32>
    %216 = tpu.concatenate %215, %197 in 1 : vector<2x32xf32>, vector<2x32xf32> -> vector<2x64xf32>
    %cst_27 = arith.constant dense<0.000000e+00> : vector<2x256xf32>
    %217 = tpu.matmul %216, %6, %cst_27 {dimension_numbers = #tpu.dot_dimension_numbers<[1], [0], [0], [1], [0, 0, 1, 1], [], []>} : vector<2x64xf32>, vector<64x256xf32>, vector<2x256xf32> -> vector<2x256xf32>
    %218 = vector.extract_strided_slice %217 {offsets = [0, 128], sizes = [2, 128], strides = [1, 1]} : vector<2x256xf32> to vector<2x128xf32>
    %219 = arith.addf %218, %9 : vector<2x128xf32>
    %220 = arith.negf %219 : vector<2x128xf32>
    %221 = math.exp %220 : vector<2x128xf32>
    %cst_28 = arith.constant 1.000000e+00 : f32
    %222 = vector.broadcast %cst_28 : f32 to vector<2x128xf32>
    %223 = arith.addf %222, %221 : vector<2x128xf32>
    %224 = arith.divf %222, %223 : vector<2x128xf32>
    %225 = math.tanh %219 : vector<2x128xf32>
    %226 = vector.extract_strided_slice %224 {offsets = [0, 0], sizes = [2, 32], strides = [1, 1]} : vector<2x128xf32> to vector<2x32xf32>
    %227 = vector.extract_strided_slice %224 {offsets = [0, 32], sizes = [2, 32], strides = [1, 1]} : vector<2x128xf32> to vector<2x32xf32>
    %228 = vector.extract_strided_slice %225 {offsets = [0, 64], sizes = [2, 32], strides = [1, 1]} : vector<2x128xf32> to vector<2x32xf32>
    %229 = vector.extract_strided_slice %224 {offsets = [0, 96], sizes = [2, 32], strides = [1, 1]} : vector<2x128xf32> to vector<2x32xf32>
    %230 = arith.mulf %227, %195 : vector<2x32xf32>
    %231 = arith.mulf %226, %228 : vector<2x32xf32>
    %232 = arith.addf %230, %231 : vector<2x32xf32>
    %233 = math.tanh %232 : vector<2x32xf32>
    %234 = arith.mulf %229, %233 : vector<2x32xf32>
    %235 = vector.extract_strided_slice %217 {offsets = [0, 0], sizes = [2, 128], strides = [1, 1]} : vector<2x256xf32> to vector<2x128xf32>
    %236 = vector.extract_strided_slice %5 {offsets = [12, 0], sizes = [2, 128], strides = [1, 1]} : vector<16x128xf32> to vector<2x128xf32>
    %237 = arith.addf %235, %236 : vector<2x128xf32>
    %238 = arith.negf %237 : vector<2x128xf32>
    %239 = math.exp %238 : vector<2x128xf32>
    %cst_29 = arith.constant 1.000000e+00 : f32
    %240 = vector.broadcast %cst_29 : f32 to vector<2x128xf32>
    %241 = arith.addf %240, %239 : vector<2x128xf32>
    %242 = arith.divf %240, %241 : vector<2x128xf32>
    %243 = math.tanh %237 : vector<2x128xf32>
    %244 = vector.extract_strided_slice %242 {offsets = [0, 0], sizes = [2, 32], strides = [1, 1]} : vector<2x128xf32> to vector<2x32xf32>
    %245 = vector.extract_strided_slice %242 {offsets = [0, 32], sizes = [2, 32], strides = [1, 1]} : vector<2x128xf32> to vector<2x32xf32>
    %246 = vector.extract_strided_slice %243 {offsets = [0, 64], sizes = [2, 32], strides = [1, 1]} : vector<2x128xf32> to vector<2x32xf32>
    %247 = vector.extract_strided_slice %242 {offsets = [0, 96], sizes = [2, 32], strides = [1, 1]} : vector<2x128xf32> to vector<2x32xf32>
    %248 = arith.mulf %245, %213 : vector<2x32xf32>
    %249 = arith.mulf %244, %246 : vector<2x32xf32>
    %250 = arith.addf %248, %249 : vector<2x32xf32>
    %251 = math.tanh %250 : vector<2x32xf32>
    %252 = arith.mulf %247, %251 : vector<2x32xf32>
    %253 = tpu.concatenate %252, %234 in 1 : vector<2x32xf32>, vector<2x32xf32> -> vector<2x64xf32>
    %cst_30 = arith.constant dense<0.000000e+00> : vector<2x256xf32>
    %254 = tpu.matmul %253, %6, %cst_30 {dimension_numbers = #tpu.dot_dimension_numbers<[1], [0], [0], [1], [0, 0, 1, 1], [], []>} : vector<2x64xf32>, vector<64x256xf32>, vector<2x256xf32> -> vector<2x256xf32>
    %255 = vector.extract_strided_slice %254 {offsets = [0, 128], sizes = [2, 128], strides = [1, 1]} : vector<2x256xf32> to vector<2x128xf32>
    %256 = arith.addf %255, %9 : vector<2x128xf32>
    %257 = arith.negf %256 : vector<2x128xf32>
    %258 = math.exp %257 : vector<2x128xf32>
    %cst_31 = arith.constant 1.000000e+00 : f32
    %259 = vector.broadcast %cst_31 : f32 to vector<2x128xf32>
    %260 = arith.addf %259, %258 : vector<2x128xf32>
    %261 = arith.divf %259, %260 : vector<2x128xf32>
    %262 = math.tanh %256 : vector<2x128xf32>
    %263 = vector.extract_strided_slice %261 {offsets = [0, 0], sizes = [2, 32], strides = [1, 1]} : vector<2x128xf32> to vector<2x32xf32>
    %264 = vector.extract_strided_slice %261 {offsets = [0, 32], sizes = [2, 32], strides = [1, 1]} : vector<2x128xf32> to vector<2x32xf32>
    %265 = vector.extract_strided_slice %262 {offsets = [0, 64], sizes = [2, 32], strides = [1, 1]} : vector<2x128xf32> to vector<2x32xf32>
    %266 = vector.extract_strided_slice %261 {offsets = [0, 96], sizes = [2, 32], strides = [1, 1]} : vector<2x128xf32> to vector<2x32xf32>
    %267 = arith.mulf %264, %232 : vector<2x32xf32>
    %268 = arith.mulf %263, %265 : vector<2x32xf32>
    %269 = arith.addf %267, %268 : vector<2x32xf32>
    %270 = math.tanh %269 : vector<2x32xf32>
    %271 = arith.mulf %266, %270 : vector<2x32xf32>
    %272 = vector.extract_strided_slice %254 {offsets = [0, 0], sizes = [2, 128], strides = [1, 1]} : vector<2x256xf32> to vector<2x128xf32>
    %273 = vector.extract_strided_slice %5 {offsets = [14, 0], sizes = [2, 128], strides = [1, 1]} : vector<16x128xf32> to vector<2x128xf32>
    %274 = arith.addf %272, %273 : vector<2x128xf32>
    %275 = arith.negf %274 : vector<2x128xf32>
    %276 = math.exp %275 : vector<2x128xf32>
    %cst_32 = arith.constant 1.000000e+00 : f32
    %277 = vector.broadcast %cst_32 : f32 to vector<2x128xf32>
    %278 = arith.addf %277, %276 : vector<2x128xf32>
    %279 = arith.divf %277, %278 : vector<2x128xf32>
    %280 = math.tanh %274 : vector<2x128xf32>
    %281 = vector.extract_strided_slice %279 {offsets = [0, 0], sizes = [2, 32], strides = [1, 1]} : vector<2x128xf32> to vector<2x32xf32>
    %282 = vector.extract_strided_slice %279 {offsets = [0, 32], sizes = [2, 32], strides = [1, 1]} : vector<2x128xf32> to vector<2x32xf32>
    %283 = vector.extract_strided_slice %280 {offsets = [0, 64], sizes = [2, 32], strides = [1, 1]} : vector<2x128xf32> to vector<2x32xf32>
    %284 = vector.extract_strided_slice %279 {offsets = [0, 96], sizes = [2, 32], strides = [1, 1]} : vector<2x128xf32> to vector<2x32xf32>
    %285 = arith.mulf %282, %250 : vector<2x32xf32>
    %286 = arith.mulf %281, %283 : vector<2x32xf32>
    %287 = arith.addf %285, %286 : vector<2x32xf32>
    %288 = math.tanh %287 : vector<2x32xf32>
    %289 = arith.mulf %284, %288 : vector<2x32xf32>
    %290 = tpu.concatenate %289, %271 in 1 : vector<2x32xf32>, vector<2x32xf32> -> vector<2x64xf32>
    %cst_33 = arith.constant dense<0.000000e+00> : vector<2x256xf32>
    %291 = tpu.matmul %290, %6, %cst_33 {dimension_numbers = #tpu.dot_dimension_numbers<[1], [0], [0], [1], [0, 0, 1, 1], [], []>} : vector<2x64xf32>, vector<64x256xf32>, vector<2x256xf32> -> vector<2x256xf32>
    %292 = vector.extract_strided_slice %291 {offsets = [0, 128], sizes = [2, 128], strides = [1, 1]} : vector<2x256xf32> to vector<2x128xf32>
    %293 = arith.addf %292, %9 : vector<2x128xf32>
    %294 = arith.negf %293 : vector<2x128xf32>
    %295 = math.exp %294 : vector<2x128xf32>
    %cst_34 = arith.constant 1.000000e+00 : f32
    %296 = vector.broadcast %cst_34 : f32 to vector<2x128xf32>
    %297 = arith.addf %296, %295 : vector<2x128xf32>
    %298 = arith.divf %296, %297 : vector<2x128xf32>
    %299 = math.tanh %293 : vector<2x128xf32>
    %300 = vector.extract_strided_slice %298 {offsets = [0, 0], sizes = [2, 32], strides = [1, 1]} : vector<2x128xf32> to vector<2x32xf32>
    %301 = vector.extract_strided_slice %298 {offsets = [0, 32], sizes = [2, 32], strides = [1, 1]} : vector<2x128xf32> to vector<2x32xf32>
    %302 = vector.extract_strided_slice %299 {offsets = [0, 64], sizes = [2, 32], strides = [1, 1]} : vector<2x128xf32> to vector<2x32xf32>
    %303 = vector.extract_strided_slice %298 {offsets = [0, 96], sizes = [2, 32], strides = [1, 1]} : vector<2x128xf32> to vector<2x32xf32>
    %304 = arith.mulf %301, %269 : vector<2x32xf32>
    %305 = arith.mulf %300, %302 : vector<2x32xf32>
    %306 = arith.addf %304, %305 : vector<2x32xf32>
    %307 = math.tanh %306 : vector<2x32xf32>
    %308 = arith.mulf %303, %307 : vector<2x32xf32>
    %c0_35 = arith.constant 0 : index
    %c0_36 = arith.constant 0 : index
    %309 = vector.load %arg5[%c0_35, %c0_36] : memref<32x16xf32, #tpu.memory_space<vmem>>, vector<32x16xf32>
    %cst_37 = arith.constant dense<0.000000e+00> : vector<2x16xf32>
    %310 = tpu.matmul %308, %309, %cst_37 {dimension_numbers = #tpu.dot_dimension_numbers<[1], [0], [0], [1], [0, 0, 1, 1], [], []>} : vector<2x32xf32>, vector<32x16xf32>, vector<2x16xf32> -> vector<2x16xf32>
    %c0_38 = arith.constant 0 : index
    %c0_39 = arith.constant 0 : index
    %311 = vector.load %arg6[%c0_38, %c0_39] : memref<1x16xf32, #tpu.memory_space<vmem>>, vector<1x16xf32>
    %312 = vector.broadcast %311 : vector<1x16xf32> to vector<2x16xf32>
    %313 = arith.addf %310, %312 : vector<2x16xf32>
    %cst_40 = arith.constant 0.000000e+00 : f32
    %314 = vector.broadcast %cst_40 : f32 to vector<2x16xf32>
    %315 = arith.maximumf %313, %314 : vector<2x16xf32>
    %c0_41 = arith.constant 0 : index
    %c0_42 = arith.constant 0 : index
    %316 = vector.load %arg7[%c0_41, %c0_42] : memref<16x4xf32, #tpu.memory_space<vmem>>, vector<16x4xf32>
    %cst_43 = arith.constant dense<0.000000e+00> : vector<2x4xf32>
    %317 = tpu.matmul %315, %316, %cst_43 {dimension_numbers = #tpu.dot_dimension_numbers<[1], [0], [0], [1], [0, 0, 1, 1], [], []>} : vector<2x16xf32>, vector<16x4xf32>, vector<2x4xf32> -> vector<2x4xf32>
    %c0_44 = arith.constant 0 : index
    %c0_45 = arith.constant 0 : index
    %318 = vector.load %arg8[%c0_44, %c0_45] : memref<1x4xf32, #tpu.memory_space<vmem>>, vector<1x4xf32>
    %319 = vector.broadcast %318 : vector<1x4xf32> to vector<2x4xf32>
    %320 = arith.addf %317, %319 : vector<2x4xf32>
    %c0_46 = arith.constant 0 : index
    %c0_47 = arith.constant 0 : index
    %321 = vector.load %arg9[%c0_46, %c0_47] : memref<2x4xf32, #tpu.memory_space<vmem>>, vector<2x4xf32>
    tpu.vector_store %arg9[%c0_46, %c0_47], %320 {strides = array<i32>} : memref<2x4xf32, #tpu.memory_space<vmem>>, vector<2x4xf32>,
    return
  }
}

</mosaic_0001>

<bundles_post_ra>
// kernel: tpu_custom_call.1
= control target key start
LH: loop header
LB: loop body
LE: loop exit
PB: predicated region body
PF: predicated region fallthrough
CT: control target
= control target key end

     0   :  { %14 = vsyncpa [#allocation3], 0  ;;  %s1898_s0 = inlined_call_operand.vmem [shape: f32[16,4], index: 0, kind: input, shape index: {}]   ;;  %s1899_s1 = inlined_call_operand.vmem [shape: f32[4,128], index: 1, kind: input, shape index: {}]   ;;  %s1900_s2 = inlined_call_operand.vmem [shape: f32[1,128], index: 2, kind: input, shape index: {}]   ;;  %s1901_s3 = inlined_call_operand.hbm [shape: f32[64,256], index: 3, kind: input, shape index: {}]   ;;  %s1902_s4 = inlined_call_operand.vmem [shape: f32[1,128], index: 4, kind: input, shape index: {}]   ;;  %s1903_s5 = inlined_call_operand.vmem [shape: f32[32,16], index: 5, kind: input, shape index: {}]   ;;  %s1904_s6 = inlined_call_operand.vmem [shape: f32[1,16], index: 6, kind: input, shape index: {}]   ;;  %s1905_s7 = inlined_call_operand.vmem [shape: f32[16,4], index: 7, kind: input, shape index: {}]   ;;  %s1906_s8 = inlined_call_operand.vmem [shape: f32[1,4], index: 8, kind: input, shape index: {}]   ;;  %s1907_s9 = inlined_call_operand.hbm [shape: f32[2,4], index: 9, kind: output, shape index: {}]  }
   0x1   :  { %15 = vsyncpa [#allocation4], 0  ;;  %s26_s11 = sshll.u32 %s1901_s3, 4  ;;  %s1460_s12 = smov [#allocation2]   ;;  %s27_s11 = int_to_ptr.hbm [resolvable:$true] %s26_s11 }
   0x2   :  { %s28_s13 = sshll.u32 %s1460_s12, 4  ;;  %s1461_s14 = smov 256   ;;  %s29_s13 = int_to_ptr.vmem [resolvable:$true] %s28_s13 }
   0x3   :  { %s1462_s15 = smov 16  }
   0x4   :  { %34 = dma.hbm_to_vmem [thread:$0]  %s27_s11, 2048, %s29_s13, [#allocation3], %s1461_s14, %s1461_s14, %s1462_s15  }
   0x5   :  { %1456 = dma.done.wait [#allocation3], 2048  }
   0x6   :  { %1457 = vsyncadd [#allocation3], 4294965248  ;;  %v1520_v0 = vld [vmem:[#allocation2 + $0x70] sm:$0xff]  ;;  %v1522_v1 = vld [vmem:[#allocation2 + $0x60] sm:$0xff]  ;;  %vm63_vm0 = vcmask 1043456   ;;  %vm56_vm1 = vcmask 31744  }
   0x7   :  { %122 = vmatpush.msra.mxu1 %v1520_v0  ;;  %189 = vmatpush.msra.mxu2 %v1520_v0  ;;  %v1526_v2 = vld [vmem:[#allocation2 + $0x50] sm:$0xff]  ;;  %v51_v3 = vld [vmem:[%s1899_s1] sm:$0xf]  ;;  %v1463_v10 = vmov 0.0   ;;  %s1464_s20 = smov 64   ;;  %v1598_v36 = vld [vmem:[#allocation2 + $0x78] sm:$0xff] }
   0x8   :  { %v49_v4 = vld [vmem:[%s1898_s0] sm:$0xff]  ;;  %1232 = vmatpush.msk.msra.mxu0 %vm63_vm0, %v51_v3  ;;  %v1541_v6 = vld [vmem:[#allocation2 + $0x30] sm:$0xff]  ;;  %v1600_v37 = vld [vmem:[#allocation2 + $0x68] sm:$0xff]  ;;  %209 = vmatpush.msra.mxu3 %v1598_v36  ;;  %vm176_vm6 = vcmask 261120   ;;  %vm110_vm7 = vcmask 523264   ;;  %s1466_s18 = smov [#allocation5]  }
   0x9   :  { %123 = vmatpush.msra.mxu1 %v1522_v1  ;;  %v1535_v5 = vld [vmem:[#allocation2 + $0x40] sm:$0xff]  ;;  %1233 = vmatmul.msk.f32.vlgmr.msra.gmra.mxu0 %vm56_vm1, %v49_v4  ;;  %v1551_v8 = vld [vmem:[#allocation2 + $0x10] sm:$0xff]  ;;  %v1604_v38 = vld [vmem:[#allocation2 + $0x58] sm:$0xff]  ;;  %s1220_s1 = sshll.u32 %s1466_s18, 4  ;;  %s1221_s1 = int_to_ptr.vmem [resolvable:$true] %s1220_s1 }
   0xa   :  { %190 = vmatpush.msra.mxu2 %v1522_v1  ;;  %320 = vmatpush.msrb.mxu0 %v1520_v0  ;;  %v1546_v7 = vld [vmem:[#allocation2 + $0x20] sm:$0xff]  ;;  %v1608_v39 = vld [vmem:[#allocation2 + $0x48] sm:$0xff]  ;;  %v1612_v40 = vld [vmem:[#allocation2 + $0x38] sm:$0xff] }
   0xb   :  { %124 = vmatpush.msra.mxu1 %v1526_v2  ;;  %v1556_v9 = vld [vmem:[#allocation2] sm:$0xff]  ;;  %210 = vmatpush.msra.mxu3 %v1600_v37  ;;  %v1616_v41 = vld [vmem:[#allocation2 + $0x28] sm:$0xff]  ;;  %v1620_v42 = vld [vmem:[#allocation2 + $0x18] sm:$0xff] }
   0xc   :  { %191 = vmatpush.msra.mxu2 %v1526_v2  ;;  %321 = vmatpush.msrb.mxu0 %v1522_v1  ;;  %v1586_v11 = vld [vmem:[%s1900_s2] ss:$0 sm:$0xff]  ;;  %s1465_s2 = smov 32   ;;  %v1627_v45 = vld [vmem:[#allocation2 + $0x8] sm:$0xff] }
   0xd   :  { %125 = vmatpush.msra.mxu1 %v1535_v5  ;;  %211 = vmatpush.msra.mxu3 %v1604_v38  ;;  %v1669_v48 = vld [vmem:[%s1902_s4] ss:$0 sm:$0xff] }
   0xe   :  { %192 = vmatpush.msra.mxu2 %v1535_v5  ;;  %322 = vmatpush.msrb.mxu0 %v1526_v2 }
   0xf   :  { %126 = vmatpush.msra.mxu1 %v1541_v6  ;;  %212 = vmatpush.msra.mxu3 %v1608_v39 }
  0x10   :  { %193 = vmatpush.msra.mxu2 %v1541_v6  ;;  %323 = vmatpush.msrb.mxu0 %v1535_v5 }
  0x11   :  { %127 = vmatpush.msra.mxu1 %v1546_v7  ;;  %213 = vmatpush.msra.mxu3 %v1612_v40 }
  0x12   :  { %194 = vmatpush.msra.mxu2 %v1546_v7  ;;  %324 = vmatpush.msrb.mxu0 %v1541_v6 }
  0x13   :  { %128 = vmatpush.msra.mxu1 %v1551_v8  ;;  %214 = vmatpush.msra.mxu3 %v1616_v41 }
  0x14   :  { %195 = vmatpush.msra.mxu2 %v1551_v8  ;;  %325 = vmatpush.msrb.mxu0 %v1546_v7 }
  0x15   :  { %129 = vmatpush.msra.mxu1 %v1556_v9  ;;  %215 = vmatpush.msra.mxu3 %v1620_v42 }
  0x16   :  { %130 = vmatmul.f32.vlgmr.msra.gmra.mxu1 %v1463_v10  ;;  %196 = vmatpush.msra.mxu2 %v1556_v9 }
  0x17   :  { %326 = vmatpush.msrb.mxu0 %v1551_v8  ;;  %340 = vmatpush.msrb.mxu1 %v1598_v36 }
  0x18   :  { %450 = vmatpush.msrb.mxu2 %v1520_v0  ;;  %216 = vmatpush.msra.mxu3 %v1627_v45 }
  0x19   :  { %327 = vmatpush.msrb.mxu0 %v1556_v9  ;;  %341 = vmatpush.msrb.mxu1 %v1600_v37 }
  0x1a   :  { %451 = vmatpush.msrb.mxu2 %v1522_v1  ;;  %470 = vmatpush.msrb.mxu3 %v1598_v36 }
  0x1b   :  { %580 = vmatpush.msra.mxu0 %v1520_v0  ;;  %342 = vmatpush.msrb.mxu1 %v1604_v38 }
  0x1c   :  { %452 = vmatpush.msrb.mxu2 %v1526_v2  ;;  %471 = vmatpush.msrb.mxu3 %v1600_v37 }
  0x1d   :  { %581 = vmatpush.msra.mxu0 %v1522_v1  ;;  %343 = vmatpush.msrb.mxu1 %v1608_v39 }
  0x1e   :  { %453 = vmatpush.msrb.mxu2 %v1535_v5  ;;  %472 = vmatpush.msrb.mxu3 %v1604_v38 }
  0x1f   :  { %582 = vmatpush.msra.mxu0 %v1526_v2  ;;  %344 = vmatpush.msrb.mxu1 %v1612_v40 }
  0x20   :  { %454 = vmatpush.msrb.mxu2 %v1541_v6  ;;  %473 = vmatpush.msrb.mxu3 %v1608_v39 }
  0x21   :  { %583 = vmatpush.msra.mxu0 %v1535_v5  ;;  %345 = vmatpush.msrb.mxu1 %v1616_v41 }
  0x22   :  { %455 = vmatpush.msrb.mxu2 %v1546_v7  ;;  %474 = vmatpush.msrb.mxu3 %v1612_v40 }
  0x23   :  { %584 = vmatpush.msra.mxu0 %v1541_v6  ;;  %346 = vmatpush.msrb.mxu1 %v1620_v42 }
  0x24   :  { %456 = vmatpush.msrb.mxu2 %v1551_v8  ;;  %475 = vmatpush.msrb.mxu3 %v1616_v41 }
  0x25   :  { %585 = vmatpush.msra.mxu0 %v1546_v7  ;;  %347 = vmatpush.msrb.mxu1 %v1627_v45 }
  0x26   :  { %457 = vmatpush.msrb.mxu2 %v1556_v9  ;;  %476 = vmatpush.msrb.mxu3 %v1620_v42 }
  0x27   :  { %586 = vmatpush.msra.mxu0 %v1551_v8  ;;  %600 = vmatpush.msra.mxu1 %v1598_v36 }
  0x28   :  { %477 = vmatpush.msrb.mxu3 %v1627_v45 }
  0x29   :  { %587 = vmatpush.msra.mxu0 %v1556_v9  ;;  %601 = vmatpush.msra.mxu1 %v1600_v37 }
  0x2b   :  { %602 = vmatpush.msra.mxu1 %v1604_v38 }
  0x2d   :  { %603 = vmatpush.msra.mxu1 %v1608_v39 }
  0x2f   :  { %604 = vmatpush.msra.mxu1 %v1612_v40 }
  0x31   :  { %605 = vmatpush.msra.mxu1 %v1616_v41 }
  0x33   :  { %606 = vmatpush.msra.mxu1 %v1620_v42 }
  0x35   :  { %607 = vmatpush.msra.mxu1 %v1627_v45 }
  0x86   :  { %v84_v12 = vpop.f32.mrf.mxu0 }
  0x87   :  { %v1589_v13 = vadd.f32 %v1586_v11, %v84_v12 }
  0x89   :  { %v260_v52 = vrot.slane %v1589_v13, 2 }
  0x93   :  { %v131_v14 = vpop.f32.mrf.mxu1 }
  0x94   :  { %v134_v15 = vadd.f32 %v131_v14, %v1589_v13 }
  0x96   :  { %1279 = vtanh.f32 %v134_v15  ;;  %v1235_v17 = vmul.f32 -1.442695, %v134_v15 }
  0x98   :  { %1281 = vpow2.f32 %v1235_v17 }
  0x9c   :  { %v1280_v16 = vpop.eup %1279 }
  0x9d   :  { %157 = vrot.lane.b32.xlu0 %v1280_v16, %s1464_s20 }
  0x9e   :  { %v1282_v18 = vpop.eup %1281 }
  0x9f   :  { %v138_v19 = vadd.f32 1.0, %v1282_v18 }
  0xa1   :  { %1283 = vrcp.f32 %v138_v19  ;;  %v150_v25 = vand.u32 2147483648, %v138_v19  ;;  %vm144_vm3 = vweird.f32 %v138_v19  ;;  %v148_v26 = vand.u32 2147483647, %v138_v19 }
  0xa3   :  { %v151_v28 = vor.u32 1.1754944e-38, %v150_v25  ;;  %vm149_vm5 = vcmp.eq.f32.partialorder %v148_v26, 8.507059e+37 }
  0xa7   :  { %v1284_v20 = vpop.eup %1283 }
  0xa8   :  { %v140_v21 = vmul.f32 %v1284_v20, %v138_v19  ;;  %vm145_vm2 = vweird.f32 %v1284_v20 }
  0xa9   :  { %vm146_vm4 = vmor %vm144_vm3, %vm145_vm2 }
  0xaa   :  { %v141_v22 = vsub.f32 1.0, %v140_v21 }
  0xac   :  { %v142_v23 = vmul.f32 %v1284_v20, %v141_v22 }
  0xae   :  { %v143_v24 = vadd.f32 %v1284_v20, %v142_v23 }
  0xb0   :  { %v147_v27 = vsel %vm146_vm4, %v1284_v20, %v143_v24 }
  0xb1   :  { %v152_v30 = vsel %vm149_vm5, %v151_v28, %v147_v27 }
  0xb2   :  { %v155_v32 = vmul.f32 0.0, %v152_v30 }
 0x10f   :  { %v158_v29 = vpop.permute.xlu0 %157 }
 0x110   :  { %v160_v31 = vmul.f32 %v158_v29, %v152_v30 }
 0x112   :  { %162 = vrot.lane.b32.xlu0 %v160_v31, %s1465_s2 }
 0x184   :  { %v163_v33 = vpop.permute.xlu0 %162 }
 0x185   :  { %v1594_v34 = vadd.f32 %v163_v33, %v155_v32 }
 0x187   :  { %1285 = vtanh.f32 %v1594_v34 }
 0x18d   :  { %v1286_v35 = vpop.eup %1285 }
 0x18e   :  { %168 = vrot.lane.b32.xlu1 %v1286_v35, %s1464_s20 }
 0x200   :  { %v169_v43 = vpop.permute.xlu1 %168 }
 0x201   :  { %v171_v44 = vmul.f32 %v169_v43, %v152_v30 }
 0x203   :  { %173 = vrot.lane.b32.xlu1 %v171_v44, %s1465_s2 }
 0x275   :  { %v174_v46 = vpop.permute.xlu1 %173 }
 0x276   :  { %v177_v47 = vsel %vm176_vm6, %v174_v46, 0.0 }
 0x277   :  { %1236 = vmatmul.msk.f32.vlgmr.msra.gmra.mxu2 %vm110_vm7, %v177_v47  ;;  %1237 = vmatmul.msk.f32.vlgmr.msra.gmra.mxu3 %vm110_vm7, %v177_v47 }
 0x278   :  { %708 = vmatpush.msra.mxu2 %v1520_v0  ;;  %728 = vmatpush.msra.mxu3 %v1598_v36 }
 0x27a   :  { %709 = vmatpush.msra.mxu2 %v1522_v1  ;;  %729 = vmatpush.msra.mxu3 %v1600_v37 }
 0x27c   :  { %710 = vmatpush.msra.mxu2 %v1526_v2  ;;  %730 = vmatpush.msra.mxu3 %v1604_v38 }
 0x27e   :  { %711 = vmatpush.msra.mxu2 %v1535_v5  ;;  %731 = vmatpush.msra.mxu3 %v1608_v39 }
 0x280   :  { %712 = vmatpush.msra.mxu2 %v1541_v6  ;;  %732 = vmatpush.msra.mxu3 %v1612_v40 }
 0x282   :  { %713 = vmatpush.msra.mxu2 %v1546_v7  ;;  %733 = vmatpush.msra.mxu3 %v1616_v41 }
 0x284   :  { %714 = vmatpush.msra.mxu2 %v1551_v8  ;;  %734 = vmatpush.msra.mxu3 %v1620_v42 }
 0x286   :  { %715 = vmatpush.msra.mxu2 %v1556_v9  ;;  %735 = vmatpush.msra.mxu3 %v1627_v45 }
 0x2fa   :  { %v218_v49 = vpop.f32.mrf.mxu3  ;;  %v198_v51 = vpop.f32.mrf.mxu2 }
 0x2fb   :  { %v221_v50 = vadd.f32 %v1669_v48, %v218_v49  ;;  %v262_v53 = vadd.f32 %v260_v52, %v198_v51 }
 0x2fd   :  { %1287 = vtanh.f32 %v221_v50  ;;  %v1238_v56 = vmul.f32 -1.442695, %v221_v50  ;;  %v1239_v57 = vmul.f32 -1.442695, %v262_v53 }
 0x2fe   :  { %1289 = vtanh.f32 %v262_v53 }
 0x2ff   :  { %1291 = vpow2.f32 %v1238_v56 }
 0x300   :  { %1293 = vpow2.f32 %v1239_v57 }
 0x303   :  { %v1288_v54 = vpop.eup %1287 }
 0x304   :  { %244 = vrot.lane.b32.xlu2 %v1288_v54, %s1464_s20  ;;  %v1290_v55 = vpop.eup %1289 }
 0x305   :  { %v1292_v58 = vpop.eup %1291 }
 0x306   :  { %v225_v59 = vadd.f32 1.0, %v1292_v58  ;;  %v1294_v60 = vpop.eup %1293  ;;  %v390_v58 = vrot.slane %v1589_v13, 4 }
 0x307   :  { %v266_v61 = vadd.f32 1.0, %v1294_v60 }
 0x308   :  { %1295 = vrcp.f32 %v225_v59  ;;  %v237_v16 = vand.u32 2147483648, %v225_v59  ;;  %vm231_vm9 = vweird.f32 %v225_v59  ;;  %v235_v17 = vand.u32 2147483647, %v225_v59 }
 0x309   :  { %1297 = vrcp.f32 %v266_v61  ;;  %v278_v25 = vand.u32 2147483648, %v266_v61  ;;  %vm272_vm13 = vweird.f32 %v266_v61  ;;  %v276_v26 = vand.u32 2147483647, %v266_v61 }
 0x30a   :  { %v238_v20 = vor.u32 1.1754944e-38, %v237_v16  ;;  %vm236_vm11 = vcmp.eq.f32.partialorder %v235_v17, 8.507059e+37 }
 0x30b   :  { %v279_v28 = vor.u32 1.1754944e-38, %v278_v25  ;;  %vm277_vm15 = vcmp.eq.f32.partialorder %v276_v26, 8.507059e+37 }
 0x30c   :  { %285 = vrot.lane.b32.xlu2 %v1290_v55, %s1464_s20 }
 0x30e   :  { %v1296_v62 = vpop.eup %1295 }
 0x30f   :  { %v227_v63 = vmul.f32 %v1296_v62, %v225_v59  ;;  %v1298_v4 = vpop.eup %1297  ;;  %vm232_vm8 = vweird.f32 %v1296_v62 }
 0x310   :  { %v268_v12 = vmul.f32 %v1298_v4, %v266_v61  ;;  %vm233_vm10 = vmor %vm231_vm9, %vm232_vm8  ;;  %vm273_vm12 = vweird.f32 %v1298_v4 }
 0x311   :  { %v228_v3 = vsub.f32 1.0, %v227_v63  ;;  %vm274_vm14 = vmor %vm272_vm13, %vm273_vm12 }
 0x312   :  { %v269_v15 = vsub.f32 1.0, %v268_v12 }
 0x313   :  { %v229_v10 = vmul.f32 %v1296_v62, %v228_v3 }
 0x314   :  { %v270_v19 = vmul.f32 %v1298_v4, %v269_v15 }
 0x315   :  { %v230_v14 = vadd.f32 %v1296_v62, %v229_v10 }
 0x316   :  { %v271_v24 = vadd.f32 %v1298_v4, %v270_v19 }
 0x317   :  { %v234_v18 = vsel %vm233_vm10, %v1296_v62, %v230_v14 }
 0x318   :  { %v239_v22 = vsel %vm236_vm11, %v238_v20, %v234_v18  ;;  %v275_v27 = vsel %vm274_vm14, %v1298_v4, %v271_v24 }
 0x319   :  { %v280_v30 = vsel %vm277_vm15, %v279_v28, %v275_v27  ;;  %v242_v32 = vmul.f32 0.0, %v239_v22 }
 0x31a   :  { %v283_v43 = vmul.f32 %v280_v30, %v1594_v34  ;;  %v50_v34 = vld [vmem:[%s1898_s0 + $0x8] sm:$0xff] }
 0x31b   :  { %1234 = vmatmul.msk.f32.gmra.mxu0 %vm56_vm1, %v50_v34 }
 0x35e   :  { %v245_v21 = vpop.permute.xlu2 %244 }
 0x35f   :  { %v247_v23 = vmul.f32 %v245_v21, %v239_v22 }
 0x361   :  { %249 = vrot.lane.b32.xlu0 %v247_v23, %s1465_s2 }
 0x366   :  { %v286_v29 = vpop.permute.xlu2 %285 }
 0x367   :  { %v288_v31 = vmul.f32 %v286_v29, %v280_v30 }
 0x369   :  { %290 = vrot.lane.b32.xlu1 %v288_v31, %s1465_s2 }
 0x398   :  { %v1711_v57 = vpop.f32.mrf.mxu0 }
 0x3d3   :  { %v250_v33 = vpop.permute.xlu0 %249 }
 0x3d4   :  { %v1677_v35 = vadd.f32 %v250_v33, %v242_v32 }
 0x3d6   :  { %1299 = vtanh.f32 %v1677_v35 }
 0x3db   :  { %v291_v44 = vpop.permute.xlu1 %290 }
 0x3dc   :  { %v1300_v46 = vpop.eup %1299  ;;  %v1681_v47 = vadd.f32 %v291_v44, %v283_v43 }
 0x3dd   :  { %255 = vrot.lane.b32.xlu2 %v1300_v46, %s1464_s20 }
 0x3de   :  { %1301 = vtanh.f32 %v1681_v47 }
 0x3e4   :  { %v1302_v49 = vpop.eup %1301 }
 0x3e5   :  { %296 = vrot.lane.b32.xlu0 %v1302_v49, %s1464_s20 }
 0x437   :  { %v256_v50 = vpop.permute.xlu2 %255 }
 0x438   :  { %v258_v51 = vmul.f32 %v256_v50, %v239_v22 }
 0x43a   :  { %305 = vrot.lane.b32.xlu2 %v258_v51, %s1464_s20 }
 0x457   :  { %v297_v52 = vpop.permute.xlu0 %296 }
 0x458   :  { %v299_v53 = vmul.f32 %v297_v52, %v280_v30 }
 0x45a   :  { %301 = vrot.lane.b32.xlu1 %v299_v53, %s1465_s2 }
 0x494   :  { %v306_v54 = vpop.permute.xlu2 %305 }
 0x4cc   :  { %v302_v55 = vpop.permute.xlu1 %301 }
 0x4cd   :  { %v308_v56 = vsel %vm176_vm6, %v302_v55, %v306_v54 }
 0x4ce   :  { %1240 = vmatmul.msk.f32.vlgmr.msrb.gmra.mxu0 %vm110_vm7, %v308_v56  ;;  %1241 = vmatmul.msk.f32.vlgmr.msrb.gmra.mxu1 %vm110_vm7, %v308_v56 }
 0x4cf   :  { %839 = vmatpush.msrb.mxu0 %v1520_v0  ;;  %859 = vmatpush.msrb.mxu1 %v1598_v36 }
 0x4d1   :  { %840 = vmatpush.msrb.mxu0 %v1522_v1  ;;  %860 = vmatpush.msrb.mxu1 %v1600_v37 }
 0x4d3   :  { %841 = vmatpush.msrb.mxu0 %v1526_v2  ;;  %861 = vmatpush.msrb.mxu1 %v1604_v38 }
 0x4d5   :  { %842 = vmatpush.msrb.mxu0 %v1535_v5  ;;  %862 = vmatpush.msrb.mxu1 %v1608_v39 }
 0x4d7   :  { %843 = vmatpush.msrb.mxu0 %v1541_v6  ;;  %863 = vmatpush.msrb.mxu1 %v1612_v40 }
 0x4d9   :  { %844 = vmatpush.msrb.mxu0 %v1546_v7  ;;  %864 = vmatpush.msrb.mxu1 %v1616_v41 }
 0x4db   :  { %845 = vmatpush.msrb.mxu0 %v1551_v8  ;;  %865 = vmatpush.msrb.mxu1 %v1620_v42 }
 0x4dd   :  { %846 = vmatpush.msrb.mxu0 %v1556_v9  ;;  %866 = vmatpush.msrb.mxu1 %v1627_v45 }
 0x54b   :  { %v329_v59 = vpop.f32.mrf.mxu0  ;;  %v349_v60 = vpop.f32.mrf.mxu1 }
 0x54c   :  { %v392_v61 = vadd.f32 %v390_v58, %v329_v59  ;;  %v352_v62 = vadd.f32 %v1669_v48, %v349_v60 }
 0x54e   :  { %1303 = vtanh.f32 %v392_v61  ;;  %v1243_v4 = vmul.f32 -1.442695, %v392_v61  ;;  %v1242_v10 = vmul.f32 -1.442695, %v352_v62 }
 0x54f   :  { %1305 = vtanh.f32 %v352_v62 }
 0x550   :  { %1307 = vpow2.f32 %v1243_v4 }
 0x551   :  { %1309 = vpow2.f32 %v1242_v10 }
 0x554   :  { %v1304_v63 = vpop.eup %1303 }
 0x555   :  { %v1306_v3 = vpop.eup %1305  ;;  %415 = vrot.lane.b32.xlu1 %v1304_v63, %s1464_s20 }
 0x556   :  { %375 = vrot.lane.b32.xlu0 %v1306_v3, %s1464_s20  ;;  %v1308_v12 = vpop.eup %1307 }
 0x557   :  { %v1310_v14 = vpop.eup %1309  ;;  %v396_v15 = vadd.f32 1.0, %v1308_v12 }
 0x558   :  { %v356_v16 = vadd.f32 1.0, %v1310_v14 }
 0x559   :  { %1311 = vrcp.f32 %v396_v15  ;;  %v408_v27 = vand.u32 2147483648, %v396_v15  ;;  %vm402_vm2 = vweird.f32 %v396_v15  ;;  %v406_v29 = vand.u32 2147483647, %v396_v15 }
 0x55a   :  { %1313 = vrcp.f32 %v356_v16  ;;  %v368_v28 = vand.u32 2147483648, %v356_v16  ;;  %vm362_vm3 = vweird.f32 %v356_v16  ;;  %v366_v30 = vand.u32 2147483647, %v356_v16 }
 0x55b   :  { %v409_v33 = vor.u32 1.1754944e-38, %v408_v27  ;;  %vm407_vm8 = vcmp.eq.f32.partialorder %v406_v29, 8.507059e+37 }
 0x55c   :  { %v369_v43 = vor.u32 1.1754944e-38, %v368_v28  ;;  %vm367_vm9 = vcmp.eq.f32.partialorder %v366_v30, 8.507059e+37 }
 0x55f   :  { %v1312_v17 = vpop.eup %1311 }
 0x560   :  { %v1314_v18 = vpop.eup %1313  ;;  %v398_v19 = vmul.f32 %v1312_v17, %v396_v15  ;;  %vm403_vm0 = vweird.f32 %v1312_v17 }
 0x561   :  { %v358_v20 = vmul.f32 %v1314_v18, %v356_v16  ;;  %vm363_vm1 = vweird.f32 %v1314_v18  ;;  %vm404_vm4 = vmor %vm402_vm2, %vm403_vm0 }
 0x562   :  { %v399_v21 = vsub.f32 1.0, %v398_v19  ;;  %vm364_vm5 = vmor %vm362_vm3, %vm363_vm1 }
 0x563   :  { %v359_v22 = vsub.f32 1.0, %v358_v20 }
 0x564   :  { %v400_v23 = vmul.f32 %v1312_v17, %v399_v21 }
 0x565   :  { %v360_v24 = vmul.f32 %v1314_v18, %v359_v22 }
 0x566   :  { %v401_v25 = vadd.f32 %v1312_v17, %v400_v23 }
 0x567   :  { %v361_v26 = vadd.f32 %v1314_v18, %v360_v24 }
 0x568   :  { %v405_v31 = vsel %vm404_vm4, %v1312_v17, %v401_v25 }
 0x569   :  { %v365_v32 = vsel %vm364_vm5, %v1314_v18, %v361_v26  ;;  %v410_v46 = vsel %vm407_vm8, %v409_v33, %v405_v31 }
 0x56a   :  { %v370_v50 = vsel %vm367_vm9, %v369_v43, %v365_v32  ;;  %v413_v56 = vmul.f32 %v410_v46, %v1681_v47 }
 0x56b   :  { %v373_v53 = vmul.f32 %v370_v50, %v1677_v35 }
 0x5c7   :  { %v416_v44 = vpop.permute.xlu1 %415 }
 0x5c8   :  { %v376_v49 = vpop.permute.xlu0 %375  ;;  %v418_v51 = vmul.f32 %v416_v44, %v410_v46 }
 0x5c9   :  { %v378_v52 = vmul.f32 %v376_v49, %v370_v50 }
 0x5ca   :  { %420 = vrot.lane.b32.xlu0 %v418_v51, %s1465_s2 }
 0x5cb   :  { %380 = vrot.lane.b32.xlu2 %v378_v52, %s1465_s2 }
 0x625   :  { %v381_v34 = vpop.permute.xlu2 %380 }
 0x626   :  { %v1720_v54 = vadd.f32 %v381_v34, %v373_v53 }
 0x628   :  { %1315 = vtanh.f32 %v1720_v54 }
 0x62e   :  { %v1316_v55 = vpop.eup %1315 }
 0x62f   :  { %386 = vrot.lane.b32.xlu1 %v1316_v55, %s1464_s20 }
 0x63c   :  { %v421_v58 = vpop.permute.xlu0 %420 }
 0x63d   :  { %v1725_v59 = vadd.f32 %v421_v58, %v413_v56 }
 0x63f   :  { %1317 = vtanh.f32 %v1725_v59 }
 0x645   :  { %v1318_v60 = vpop.eup %1317 }
 0x646   :  { %426 = vrot.lane.b32.xlu2 %v1318_v60, %s1464_s20 }
 0x6a0   :  { %v427_v61 = vpop.permute.xlu2 %426 }
 0x6a1   :  { %v387_v35 = vpop.permute.xlu1 %386  ;;  %v429_v62 = vmul.f32 %v427_v61, %v410_v46 }
 0x6a2   :  { %v389_v63 = vmul.f32 %v387_v35, %v370_v50 }
 0x6a3   :  { %431 = vrot.lane.b32.xlu0 %v429_v62, %s1465_s2 }
 0x6a4   :  { %435 = vrot.lane.b32.xlu1 %v389_v63, %s1464_s20 }
 0x715   :  { %v432_v3 = vpop.permute.xlu0 %431 }
 0x716   :  { %v436_v4 = vpop.permute.xlu1 %435 }
 0x717   :  { %v438_v47 = vsel %vm176_vm6, %v432_v3, %v436_v4 }
 0x718   :  { %1244 = vmatmul.msk.f32.vlgmr.msrb.gmra.mxu2 %vm110_vm7, %v438_v47  ;;  %1245 = vmatmul.msk.f32.vlgmr.msrb.gmra.mxu3 %vm110_vm7, %v438_v47  ;;  %v1781_v47 = vadd.f32 %v1586_v11, %v1711_v57 }
 0x719   :  { %969 = vmatpush.msrb.mxu2 %v1520_v0  ;;  %989 = vmatpush.msrb.mxu3 %v1598_v36  ;;  %v520_v0 = vrot.slane %v1589_v13, 6 }
 0x71b   :  { %970 = vmatpush.msrb.mxu2 %v1522_v1  ;;  %990 = vmatpush.msrb.mxu3 %v1600_v37 }
 0x71d   :  { %971 = vmatpush.msrb.mxu2 %v1526_v2  ;;  %991 = vmatpush.msrb.mxu3 %v1604_v38 }
 0x71f   :  { %972 = vmatpush.msrb.mxu2 %v1535_v5  ;;  %992 = vmatpush.msrb.mxu3 %v1608_v39 }
 0x721   :  { %973 = vmatpush.msrb.mxu2 %v1541_v6  ;;  %993 = vmatpush.msrb.mxu3 %v1612_v40 }
 0x723   :  { %974 = vmatpush.msrb.mxu2 %v1546_v7  ;;  %994 = vmatpush.msrb.mxu3 %v1616_v41 }
 0x725   :  { %975 = vmatpush.msrb.mxu2 %v1551_v8  ;;  %995 = vmatpush.msrb.mxu3 %v1620_v42 }
 0x727   :  { %976 = vmatpush.msrb.mxu2 %v1556_v9  ;;  %996 = vmatpush.msrb.mxu3 %v1627_v45 }
 0x79b   :  { %v459_v1 = vpop.f32.mrf.mxu2  ;;  %v479_v2 = vpop.f32.mrf.mxu3 }
 0x79c   :  { %v522_v5 = vadd.f32 %v520_v0, %v459_v1  ;;  %v482_v6 = vadd.f32 %v1669_v48, %v479_v2 }
 0x79e   :  { %1319 = vtanh.f32 %v522_v5  ;;  %v1246_v8 = vmul.f32 -1.442695, %v482_v6  ;;  %v1247_v13 = vmul.f32 -1.442695, %v522_v5 }
 0x79f   :  { %1321 = vtanh.f32 %v482_v6 }
 0x7a0   :  { %1323 = vpow2.f32 %v1246_v8 }
 0x7a4   :  { %v1320_v7 = vpop.eup %1319 }
 0x7a5   :  { %v1322_v10 = vpop.eup %1321  ;;  %545 = vrot.lane.b32.xlu0 %v1320_v7, %s1464_s20 }
 0x7a6   :  { %505 = vrot.lane.b32.xlu2 %v1322_v10, %s1464_s20  ;;  %v1324_v9 = vpop.eup %1323 }
 0x7a7   :  { %v486_v12 = vadd.f32 1.0, %v1324_v9 }
 0x7a9   :  { %1325 = vrcp.f32 %v486_v12  ;;  %v498_v21 = vand.u32 2147483648, %v486_v12  ;;  %vm492_vm11 = vweird.f32 %v486_v12  ;;  %v496_v22 = vand.u32 2147483647, %v486_v12 }
 0x7aa   :  { %1327 = vpow2.f32 %v1247_v13 }
 0x7ab   :  { %v499_v24 = vor.u32 1.1754944e-38, %v498_v21  ;;  %vm497_vm13 = vcmp.eq.f32.partialorder %v496_v22, 8.507059e+37 }
 0x7af   :  { %v1326_v14 = vpop.eup %1325 }
 0x7b0   :  { %v488_v15 = vmul.f32 %v1326_v14, %v486_v12  ;;  %v1328_v17 = vpop.eup %1327  ;;  %vm493_vm10 = vweird.f32 %v1326_v14 }
 0x7b1   :  { %v526_v19 = vadd.f32 1.0, %v1328_v17  ;;  %vm494_vm12 = vmor %vm492_vm11, %vm493_vm10 }
 0x7b2   :  { %v489_v16 = vsub.f32 1.0, %v488_v15 }
 0x7b3   :  { %1329 = vrcp.f32 %v526_v19  ;;  %v538_v33 = vand.u32 2147483648, %v526_v19  ;;  %vm532_vm15 = vweird.f32 %v526_v19  ;;  %v536_v43 = vand.u32 2147483647, %v526_v19 }
 0x7b4   :  { %v490_v18 = vmul.f32 %v1326_v14, %v489_v16 }
 0x7b5   :  { %v539_v46 = vor.u32 1.1754944e-38, %v538_v33  ;;  %vm537_vm1 = vcmp.eq.f32.partialorder %v536_v43, 8.507059e+37 }
 0x7b6   :  { %v491_v20 = vadd.f32 %v1326_v14, %v490_v18 }
 0x7b8   :  { %v495_v23 = vsel %vm494_vm12, %v1326_v14, %v491_v20 }
 0x7b9   :  { %v500_v26 = vsel %vm497_vm13, %v499_v24, %v495_v23  ;;  %v1330_v27 = vpop.eup %1329 }
 0x7ba   :  { %v528_v29 = vmul.f32 %v1330_v27, %v526_v19  ;;  %vm533_vm14 = vweird.f32 %v1330_v27  ;;  %v503_v53 = vmul.f32 %v500_v26, %v1720_v54 }
 0x7bb   :  { %vm534_vm0 = vmor %vm532_vm15, %vm533_vm14 }
 0x7bc   :  { %v529_v30 = vsub.f32 1.0, %v528_v29 }
 0x7be   :  { %v530_v31 = vmul.f32 %v1330_v27, %v529_v30 }
 0x7c0   :  { %v531_v32 = vadd.f32 %v1330_v27, %v530_v31 }
 0x7c2   :  { %v535_v44 = vsel %vm534_vm0, %v1330_v27, %v531_v32 }
 0x7c3   :  { %v540_v50 = vsel %vm537_vm1, %v539_v46, %v535_v44 }
 0x7c4   :  { %v543_v52 = vmul.f32 %v540_v50, %v1725_v59 }
 0x800   :  { %v506_v25 = vpop.permute.xlu2 %505 }
 0x801   :  { %v508_v28 = vmul.f32 %v506_v25, %v500_v26 }
 0x803   :  { %510 = vrot.lane.b32.xlu1 %v508_v28, %s1465_s2 }
 0x817   :  { %v546_v49 = vpop.permute.xlu0 %545 }
 0x818   :  { %v548_v51 = vmul.f32 %v546_v49, %v540_v50 }
 0x81a   :  { %550 = vrot.lane.b32.xlu2 %v548_v51, %s1465_s2 }
 0x874   :  { %v551_v34 = vpop.permute.xlu2 %550 }
 0x875   :  { %v511_v55 = vpop.permute.xlu1 %510  ;;  %v1758_v56 = vadd.f32 %v551_v34, %v543_v52 }
 0x876   :  { %v1760_v58 = vadd.f32 %v511_v55, %v503_v53 }
 0x877   :  { %1331 = vtanh.f32 %v1758_v56 }
 0x878   :  { %1333 = vtanh.f32 %v1760_v58 }
 0x87d   :  { %v1332_v60 = vpop.eup %1331 }
 0x87e   :  { %v1334_v61 = vpop.eup %1333  ;;  %556 = vrot.lane.b32.xlu1 %v1332_v60, %s1464_s20 }
 0x87f   :  { %516 = vrot.lane.b32.xlu0 %v1334_v61, %s1464_s20 }
 0x8f0   :  { %v557_v35 = vpop.permute.xlu1 %556 }
 0x8f1   :  { %v517_v59 = vpop.permute.xlu0 %516  ;;  %v559_v62 = vmul.f32 %v557_v35, %v540_v50 }
 0x8f2   :  { %v519_v54 = vmul.f32 %v517_v59, %v500_v26 }
 0x8f3   :  { %561 = vrot.lane.b32.xlu2 %v559_v62, %s1465_s2 }
 0x8f4   :  { %565 = vrot.lane.b32.xlu0 %v519_v54, %s1464_s20 }
 0x94d   :  { %v562_v63 = vpop.permute.xlu2 %561 }
 0x966   :  { %v566_v3 = vpop.permute.xlu0 %565 }
 0x967   :  { %v568_v4 = vsel %vm176_vm6, %v562_v63, %v566_v3 }
 0x968   :  { %1248 = vmatmul.msk.f32.vlgmr.msra.gmra.mxu0 %vm110_vm7, %v568_v4  ;;  %1249 = vmatmul.msk.f32.vlgmr.msra.gmra.mxu1 %vm110_vm7, %v568_v4 }
 0x969   :  { %1099 = vmatpush.msra.mxu0 %v1598_v36 }
 0x96b   :  { %1100 = vmatpush.msra.mxu0 %v1600_v37 }
 0x96d   :  { %1101 = vmatpush.msra.mxu0 %v1604_v38 }
 0x96f   :  { %1102 = vmatpush.msra.mxu0 %v1608_v39 }
 0x971   :  { %1103 = vmatpush.msra.mxu0 %v1612_v40 }
 0x973   :  { %1104 = vmatpush.msra.mxu0 %v1616_v41 }
 0x975   :  { %1105 = vmatpush.msra.mxu0 %v1620_v42 }
 0x977   :  { %1106 = vmatpush.msra.mxu0 %v1627_v45 }
 0x9e5   :  { %v589_v0 = vpop.f32.mrf.mxu0  ;;  %v609_v36 = vpop.f32.mrf.mxu1 }
 0x9e6   :  { %v650_v37 = vadd.f32 %v589_v0, %v1781_v47  ;;  %v612_v38 = vadd.f32 %v1669_v48, %v609_v36 }
 0x9e8   :  { %1335 = vtanh.f32 %v650_v37  ;;  %v1251_v41 = vmul.f32 -1.442695, %v650_v37  ;;  %v1250_v57 = vmul.f32 -1.442695, %v612_v38 }
 0x9e9   :  { %1337 = vtanh.f32 %v612_v38 }
 0x9ea   :  { %1339 = vpow2.f32 %v1251_v41 }
 0x9ee   :  { %v1336_v39 = vpop.eup %1335 }
 0x9ef   :  { %v1338_v40 = vpop.eup %1337  ;;  %673 = vrot.lane.b32.xlu2 %v1336_v39, %s1464_s20 }
 0x9f0   :  { %635 = vrot.lane.b32.xlu1 %v1338_v40, %s1464_s20  ;;  %v1340_v42 = vpop.eup %1339 }
 0x9f1   :  { %v654_v45 = vadd.f32 1.0, %v1340_v42 }
 0x9f3   :  { %1341 = vrcp.f32 %v654_v45  ;;  %v666_v8 = vand.u32 2147483648, %v654_v45  ;;  %vm660_vm3 = vweird.f32 %v654_v45  ;;  %v664_v9 = vand.u32 2147483647, %v654_v45 }
 0x9f4   :  { %1343 = vpow2.f32 %v1250_v57 }
 0x9f5   :  { %v667_v14 = vor.u32 1.1754944e-38, %v666_v8  ;;  %vm665_vm5 = vcmp.eq.f32.partialorder %v664_v9, 8.507059e+37 }
 0x9f9   :  { %v1342_v11 = vpop.eup %1341 }
 0x9fa   :  { %v656_v1 = vmul.f32 %v1342_v11, %v654_v45  ;;  %v1344_v6 = vpop.eup %1343  ;;  %vm661_vm2 = vweird.f32 %v1342_v11 }
 0x9fb   :  { %v616_v7 = vadd.f32 1.0, %v1344_v6  ;;  %vm662_vm4 = vmor %vm660_vm3, %vm661_vm2 }
 0x9fc   :  { %v657_v2 = vsub.f32 1.0, %v656_v1 }
 0x9fd   :  { %1345 = vrcp.f32 %v616_v7  ;;  %v628_v22 = vand.u32 2147483648, %v616_v7  ;;  %vm622_vm9 = vweird.f32 %v616_v7  ;;  %v626_v23 = vand.u32 2147483647, %v616_v7 }
 0x9fe   :  { %v658_v5 = vmul.f32 %v1342_v11, %v657_v2 }
 0x9ff   :  { %v629_v25 = vor.u32 1.1754944e-38, %v628_v22  ;;  %vm627_vm11 = vcmp.eq.f32.partialorder %v626_v23, 8.507059e+37 }
 0xa00   :  { %v659_v10 = vadd.f32 %v1342_v11, %v658_v5 }
 0xa02   :  { %v663_v12 = vsel %vm662_vm4, %v1342_v11, %v659_v10 }
 0xa03   :  { %v668_v15 = vsel %vm665_vm5, %v667_v14, %v663_v12  ;;  %v1346_v17 = vpop.eup %1345 }
 0xa04   :  { %v618_v18 = vmul.f32 %v1346_v17, %v616_v7  ;;  %vm623_vm8 = vweird.f32 %v1346_v17  ;;  %v671_v29 = vmul.f32 %v668_v15, %v1758_v56  ;;  %v779_v56 = vrot.slane %v1781_v47, 2 }
 0xa05   :  { %vm624_vm10 = vmor %vm622_vm9, %vm623_vm8 }
 0xa06   :  { %v619_v19 = vsub.f32 1.0, %v618_v18 }
 0xa08   :  { %v620_v20 = vmul.f32 %v1346_v17, %v619_v19 }
 0xa0a   :  { %v621_v21 = vadd.f32 %v1346_v17, %v620_v20 }
 0xa0c   :  { %v625_v24 = vsel %vm624_vm10, %v1346_v17, %v621_v21 }
 0xa0d   :  { %v630_v27 = vsel %vm627_vm11, %v629_v25, %v625_v24 }
 0xa0e   :  { %v633_v33 = vmul.f32 %v630_v27, %v1760_v58 }
 0xa49   :  { %v674_v13 = vpop.permute.xlu2 %673 }
 0xa4a   :  { %v676_v16 = vmul.f32 %v674_v13, %v668_v15 }
 0xa4c   :  { %678 = vrot.lane.b32.xlu1 %v676_v16, %s1465_s2 }
 0xa62   :  { %v636_v26 = vpop.permute.xlu1 %635 }
 0xa63   :  { %v638_v28 = vmul.f32 %v636_v26, %v630_v27 }
 0xa65   :  { %640 = vrot.lane.b32.xlu0 %v638_v28, %s1465_s2 }
 0xabe   :  { %v679_v30 = vpop.permute.xlu1 %678 }
 0xabf   :  { %v1790_v31 = vadd.f32 %v679_v30, %v671_v29 }
 0xac1   :  { %1347 = vtanh.f32 %v1790_v31 }
 0xac7   :  { %v1348_v32 = vpop.eup %1347 }
 0xac8   :  { %684 = vrot.lane.b32.xlu0 %v1348_v32, %s1464_s20 }
 0xad7   :  { %v641_v43 = vpop.permute.xlu0 %640 }
 0xad8   :  { %v1795_v44 = vadd.f32 %v641_v43, %v633_v33  ;;  %v909_v43 = vrot.slane %v1781_v47, 4 }
 0xada   :  { %1349 = vtanh.f32 %v1795_v44 }
 0xae0   :  { %v1350_v46 = vpop.eup %1349 }
 0xae1   :  { %646 = vrot.lane.b32.xlu2 %v1350_v46, %s1464_s20 }
 0xb3a   :  { %v685_v49 = vpop.permute.xlu0 %684 }
 0xb3b   :  { %v647_v50 = vpop.permute.xlu2 %646  ;;  %v687_v51 = vmul.f32 %v685_v49, %v668_v15 }
 0xb3c   :  { %v649_v52 = vmul.f32 %v647_v50, %v630_v27 }
 0xb3d   :  { %689 = vrot.lane.b32.xlu1 %v687_v51, %s1465_s2 }
 0xb3e   :  { %693 = vrot.lane.b32.xlu2 %v649_v52, %s1464_s20 }
 0xb98   :  { %v694_v53 = vpop.permute.xlu2 %693 }
 0xbaf   :  { %v690_v34 = vpop.permute.xlu1 %689 }
 0xbb0   :  { %v696_v55 = vsel %vm176_vm6, %v690_v34, %v694_v53 }
 0xbb1   :  { %1252 = vmatmul.msk.f32.vlgmr.msra.gmra.mxu2 %vm110_vm7, %v696_v55  ;;  %1253 = vmatmul.msk.f32.vlgmr.msra.gmra.mxu3 %vm110_vm7, %v696_v55 }
 0xc34   :  { %v717_v58 = vpop.f32.mrf.mxu2  ;;  %v737_v60 = vpop.f32.mrf.mxu3 }
 0xc35   :  { %v781_v61 = vadd.f32 %v779_v56, %v717_v58  ;;  %v740_v35 = vadd.f32 %v1669_v48, %v737_v60 }
 0xc37   :  { %1351 = vtanh.f32 %v781_v61  ;;  %v1255_v54 = vmul.f32 -1.442695, %v781_v61  ;;  %v1254_v63 = vmul.f32 -1.442695, %v740_v35 }
 0xc38   :  { %1353 = vtanh.f32 %v740_v35 }
 0xc39   :  { %1355 = vpow2.f32 %v1255_v54 }
 0xc3a   :  { %1357 = vpow2.f32 %v1254_v63 }
 0xc3d   :  { %v1352_v59 = vpop.eup %1351 }
 0xc3e   :  { %v1354_v62 = vpop.eup %1353  ;;  %804 = vrot.lane.b32.xlu1 %v1352_v59, %s1464_s20 }
 0xc3f   :  { %763 = vrot.lane.b32.xlu0 %v1354_v62, %s1464_s20  ;;  %v1356_v3 = vpop.eup %1355 }
 0xc40   :  { %v1358_v4 = vpop.eup %1357  ;;  %v785_v0 = vadd.f32 1.0, %v1356_v3 }
 0xc41   :  { %v744_v36 = vadd.f32 1.0, %v1358_v4 }
 0xc42   :  { %1359 = vrcp.f32 %v785_v0  ;;  %v797_v2 = vand.u32 2147483648, %v785_v0  ;;  %vm791_vm14 = vweird.f32 %v785_v0  ;;  %v795_v6 = vand.u32 2147483647, %v785_v0 }
 0xc43   :  { %1361 = vrcp.f32 %v744_v36  ;;  %v756_v5 = vand.u32 2147483648, %v744_v36  ;;  %vm750_vm15 = vweird.f32 %v744_v36  ;;  %v754_v7 = vand.u32 2147483647, %v744_v36 }
 0xc44   :  { %v798_v9 = vor.u32 1.1754944e-38, %v797_v2  ;;  %vm796_vm2 = vcmp.eq.f32.partialorder %v795_v6, 8.507059e+37 }
 0xc45   :  { %v757_v12 = vor.u32 1.1754944e-38, %v756_v5  ;;  %vm755_vm3 = vcmp.eq.f32.partialorder %v754_v7, 8.507059e+37 }
 0xc48   :  { %v1360_v37 = vpop.eup %1359 }
 0xc49   :  { %v1362_v38 = vpop.eup %1361  ;;  %v787_v39 = vmul.f32 %v1360_v37, %v785_v0  ;;  %vm792_vm12 = vweird.f32 %v1360_v37 }
 0xc4a   :  { %v746_v40 = vmul.f32 %v1362_v38, %v744_v36  ;;  %vm751_vm13 = vweird.f32 %v1362_v38  ;;  %vm793_vm0 = vmor %vm791_vm14, %vm792_vm12 }
 0xc4b   :  { %v788_v41 = vsub.f32 1.0, %v787_v39  ;;  %vm752_vm1 = vmor %vm750_vm15, %vm751_vm13 }
 0xc4c   :  { %v747_v42 = vsub.f32 1.0, %v746_v40 }
 0xc4d   :  { %v789_v45 = vmul.f32 %v1360_v37, %v788_v41 }
 0xc4e   :  { %v748_v11 = vmul.f32 %v1362_v38, %v747_v42 }
 0xc4f   :  { %v790_v57 = vadd.f32 %v1360_v37, %v789_v45 }
 0xc50   :  { %v749_v1 = vadd.f32 %v1362_v38, %v748_v11 }
 0xc51   :  { %v794_v10 = vsel %vm793_vm0, %v1360_v37, %v790_v57 }
 0xc52   :  { %v753_v8 = vsel %vm752_vm1, %v1362_v38, %v749_v1  ;;  %v799_v13 = vsel %vm796_vm2, %v798_v9, %v794_v10 }
 0xc53   :  { %v758_v16 = vsel %vm755_vm3, %v757_v12, %v753_v8  ;;  %v802_v23 = vmul.f32 %v799_v13, %v1790_v31 }
 0xc54   :  { %v761_v19 = vmul.f32 %v758_v16, %v1795_v44 }
 0xcb0   :  { %v805_v14 = vpop.permute.xlu1 %804 }
 0xcb1   :  { %v764_v15 = vpop.permute.xlu0 %763  ;;  %v807_v17 = vmul.f32 %v805_v14, %v799_v13 }
 0xcb2   :  { %v766_v18 = vmul.f32 %v764_v15, %v758_v16 }
 0xcb3   :  { %809 = vrot.lane.b32.xlu0 %v807_v17, %s1465_s2 }
 0xcb4   :  { %768 = vrot.lane.b32.xlu2 %v766_v18, %s1465_s2 }
 0xd0e   :  { %v769_v20 = vpop.permute.xlu2 %768 }
 0xd0f   :  { %v1811_v21 = vadd.f32 %v769_v20, %v761_v19 }
 0xd11   :  { %1363 = vtanh.f32 %v1811_v21 }
 0xd17   :  { %v1364_v22 = vpop.eup %1363 }
 0xd18   :  { %774 = vrot.lane.b32.xlu1 %v1364_v22, %s1464_s20 }
 0xd25   :  { %v810_v24 = vpop.permute.xlu0 %809 }
 0xd26   :  { %v1816_v25 = vadd.f32 %v810_v24, %v802_v23  ;;  %v1039_v23 = vrot.slane %v1781_v47, 6 }
 0xd28   :  { %1365 = vtanh.f32 %v1816_v25 }
 0xd2e   :  { %v1366_v26 = vpop.eup %1365 }
 0xd2f   :  { %815 = vrot.lane.b32.xlu2 %v1366_v26, %s1464_s20 }
 0xd89   :  { %v816_v27 = vpop.permute.xlu2 %815 }
 0xd8a   :  { %v775_v28 = vpop.permute.xlu1 %774  ;;  %v818_v29 = vmul.f32 %v816_v27, %v799_v13  ;;  %v1850_v27 = vld [vmem:[%s1902_s4] ss:$0 sm:$0xff] }
 0xd8b   :  { %v777_v30 = vmul.f32 %v775_v28, %v758_v16 }
 0xd8c   :  { %820 = vrot.lane.b32.xlu0 %v818_v29, %s1465_s2 }
 0xd8d   :  { %824 = vrot.lane.b32.xlu1 %v777_v30, %s1464_s20 }
 0xdfe   :  { %v821_v32 = vpop.permute.xlu0 %820 }
 0xdff   :  { %v825_v33 = vpop.permute.xlu1 %824 }
 0xe00   :  { %v827_v31 = vsel %vm176_vm6, %v821_v32, %v825_v33 }
 0xe01   :  { %1256 = vmatmul.msk.f32.vlgmr.msrb.gmra.mxu0 %vm110_vm7, %v827_v31  ;;  %1257 = vmatmul.msk.f32.vlgmr.msrb.gmra.mxu1 %vm110_vm7, %v827_v31 }
 0xe7e   :  { %v848_v44 = vpop.f32.mrf.mxu0  ;;  %v868_v46 = vpop.f32.mrf.mxu1 }
 0xe7f   :  { %v911_v49 = vadd.f32 %v909_v43, %v848_v44  ;;  %v871_v50 = vadd.f32 %v1669_v48, %v868_v46 }
 0xe81   :  { %1367 = vtanh.f32 %v911_v49  ;;  %v1258_v53 = vmul.f32 -1.442695, %v871_v50  ;;  %v1259_v58 = vmul.f32 -1.442695, %v911_v49 }
 0xe82   :  { %1369 = vtanh.f32 %v871_v50 }
 0xe83   :  { %1371 = vpow2.f32 %v1258_v53 }
 0xe87   :  { %v1368_v51 = vpop.eup %1367 }
 0xe88   :  { %v1370_v52 = vpop.eup %1369  ;;  %934 = vrot.lane.b32.xlu0 %v1368_v51, %s1464_s20 }
 0xe89   :  { %894 = vrot.lane.b32.xlu2 %v1370_v52, %s1464_s20  ;;  %v1372_v34 = vpop.eup %1371 }
 0xe8a   :  { %v875_v55 = vadd.f32 1.0, %v1372_v34 }
 0xe8c   :  { %1373 = vrcp.f32 %v875_v55  ;;  %v887_v54 = vand.u32 2147483648, %v875_v55  ;;  %vm881_vm5 = vweird.f32 %v875_v55  ;;  %v885_v63 = vand.u32 2147483647, %v875_v55 }
 0xe8d   :  { %1375 = vpow2.f32 %v1259_v58 }
 0xe8e   :  { %v888_v4 = vor.u32 1.1754944e-38, %v887_v54  ;;  %vm886_vm9 = vcmp.eq.f32.partialorder %v885_v63, 8.507059e+37 }
 0xe92   :  { %v1374_v56 = vpop.eup %1373 }
 0xe93   :  { %v877_v60 = vmul.f32 %v1374_v56, %v875_v55  ;;  %v1376_v35 = vpop.eup %1375  ;;  %vm882_vm4 = vweird.f32 %v1374_v56 }
 0xe94   :  { %v915_v59 = vadd.f32 1.0, %v1376_v35  ;;  %vm883_vm8 = vmor %vm881_vm5, %vm882_vm4 }
 0xe95   :  { %v878_v61 = vsub.f32 1.0, %v877_v60 }
 0xe96   :  { %1377 = vrcp.f32 %v915_v59  ;;  %v927_v45 = vand.u32 2147483648, %v915_v59  ;;  %vm921_vm11 = vweird.f32 %v915_v59  ;;  %v925_v11 = vand.u32 2147483647, %v915_v59 }
 0xe97   :  { %v879_v48 = vmul.f32 %v1374_v56, %v878_v61 }
 0xe98   :  { %v928_v1 = vor.u32 1.1754944e-38, %v927_v45  ;;  %vm926_vm13 = vcmp.eq.f32.partialorder %v925_v11, 8.507059e+37 }
 0xe99   :  { %v880_v62 = vadd.f32 %v1374_v56, %v879_v48 }
 0xe9b   :  { %v884_v3 = vsel %vm883_vm8, %v1374_v56, %v880_v62 }
 0xe9c   :  { %v889_v36 = vsel %vm886_vm9, %v888_v4, %v884_v3  ;;  %v1378_v37 = vpop.eup %1377 }
 0xe9d   :  { %v917_v39 = vmul.f32 %v1378_v37, %v915_v59  ;;  %vm922_vm10 = vweird.f32 %v1378_v37  ;;  %v892_v10 = vmul.f32 %v889_v36, %v1811_v21 }
 0xe9e   :  { %vm923_vm12 = vmor %vm921_vm11, %vm922_vm10  ;;  %vm1189_vm11 = vcmask 130048  }
 0xe9f   :  { %v918_v40 = vsub.f32 1.0, %v917_v39 }
 0xea1   :  { %v919_v41 = vmul.f32 %v1378_v37, %v918_v40 }
 0xea3   :  { %v920_v42 = vadd.f32 %v1378_v37, %v919_v41 }
 0xea5   :  { %v924_v57 = vsel %vm923_vm12, %v1378_v37, %v920_v42 }
 0xea6   :  { %v929_v5 = vsel %vm926_vm13, %v928_v1, %v924_v57 }
 0xea7   :  { %v932_v7 = vmul.f32 %v929_v5, %v1816_v25 }
 0xee3   :  { %v895_v0 = vpop.permute.xlu2 %894 }
 0xee4   :  { %v897_v38 = vmul.f32 %v895_v0, %v889_v36 }
 0xee6   :  { %899 = vrot.lane.b32.xlu1 %v897_v38, %s1465_s2 }
 0xefa   :  { %v935_v2 = vpop.permute.xlu0 %934 }
 0xefb   :  { %v937_v6 = vmul.f32 %v935_v2, %v929_v5 }
 0xefd   :  { %939 = vrot.lane.b32.xlu2 %v937_v6, %s1465_s2 }
 0xf57   :  { %v940_v8 = vpop.permute.xlu2 %939 }
 0xf58   :  { %v900_v9 = vpop.permute.xlu1 %899  ;;  %v1833_v12 = vadd.f32 %v940_v8, %v932_v7 }
 0xf59   :  { %v1835_v14 = vadd.f32 %v900_v9, %v892_v10 }
 0xf5a   :  { %1379 = vtanh.f32 %v1833_v12 }
 0xf5b   :  { %1381 = vtanh.f32 %v1835_v14 }
 0xf60   :  { %v1380_v13 = vpop.eup %1379 }
 0xf61   :  { %v1382_v15 = vpop.eup %1381  ;;  %945 = vrot.lane.b32.xlu1 %v1380_v13, %s1464_s20 }
 0xf62   :  { %905 = vrot.lane.b32.xlu0 %v1382_v15, %s1464_s20 }
 0xfd3   :  { %v946_v16 = vpop.permute.xlu1 %945 }
 0xfd4   :  { %v906_v17 = vpop.permute.xlu0 %905  ;;  %v948_v18 = vmul.f32 %v946_v16, %v929_v5 }
 0xfd5   :  { %v908_v19 = vmul.f32 %v906_v17, %v889_v36 }
 0xfd6   :  { %950 = vrot.lane.b32.xlu2 %v948_v18, %s1465_s2 }
 0xfd7   :  { %954 = vrot.lane.b32.xlu0 %v908_v19, %s1464_s20 }
0x1030   :  { %v951_v20 = vpop.permute.xlu2 %950 }
0x1049   :  { %v955_v21 = vpop.permute.xlu0 %954 }
0x104a   :  { %v957_v22 = vsel %vm176_vm6, %v951_v20, %v955_v21 }
0x104b   :  { %1260 = vmatmul.msk.f32.vlgmr.msrb.gmra.mxu2 %vm110_vm7, %v957_v22  ;;  %1261 = vmatmul.msk.f32.vlgmr.msrb.gmra.mxu3 %vm110_vm7, %v957_v22 }
0x10ce   :  { %v978_v24 = vpop.f32.mrf.mxu2  ;;  %v998_v25 = vpop.f32.mrf.mxu3 }
0x10cf   :  { %v1041_v26 = vadd.f32 %v1039_v23, %v978_v24  ;;  %v1001_v28 = vadd.f32 %v1850_v27, %v998_v25 }
0x10d1   :  { %1383 = vtanh.f32 %v1041_v26  ;;  %v1263_v32 = vmul.f32 -1.442695, %v1041_v26  ;;  %v1262_v43 = vmul.f32 -1.442695, %v1001_v28 }
0x10d2   :  { %1385 = vtanh.f32 %v1001_v28 }
0x10d3   :  { %1387 = vpow2.f32 %v1263_v32 }
0x10d7   :  { %v1384_v29 = vpop.eup %1383 }
0x10d8   :  { %v1386_v30 = vpop.eup %1385  ;;  %1064 = vrot.lane.b32.xlu2 %v1384_v29, %s1464_s20 }
0x10d9   :  { %1024 = vrot.lane.b32.xlu1 %v1386_v30, %s1464_s20  ;;  %v1388_v47 = vpop.eup %1387 }
0x10da   :  { %v1045_v33 = vadd.f32 1.0, %v1388_v47 }
0x10dc   :  { %1389 = vrcp.f32 %v1045_v33  ;;  %v1057_v53 = vand.u32 2147483648, %v1045_v33  ;;  %vm1051_vm15 = vweird.f32 %v1045_v33  ;;  %v1055_v34 = vand.u32 2147483647, %v1045_v33 }
0x10dd   :  { %1391 = vpow2.f32 %v1262_v43  ;;  %v1151_v43 = vld [vmem:[%s1903_s5 + $0x10] sm:$0xff] }
0x10de   :  { %v1058_v56 = vor.u32 1.1754944e-38, %v1057_v53  ;;  %vm1056_vm1 = vcmp.eq.f32.partialorder %v1055_v34, 8.507059e+37  ;;  %v1183_v53 = vld [vmem:[%s1905_s7] sm:$0xff] }
0x10df   :  { %v1277_v34 = vld [vmem:[%s1904_s6] ss:$0 sm:$0xff] }
0x10e2   :  { %v1390_v31 = vpop.eup %1389 }
0x10e3   :  { %v1047_v44 = vmul.f32 %v1390_v31, %v1045_v33  ;;  %v1392_v50 = vpop.eup %1391  ;;  %vm1052_vm14 = vweird.f32 %v1390_v31 }
0x10e4   :  { %v1005_v51 = vadd.f32 1.0, %v1392_v50  ;;  %vm1053_vm0 = vmor %vm1051_vm15, %vm1052_vm14 }
0x10e5   :  { %v1048_v46 = vsub.f32 1.0, %v1047_v44  ;;  %v1150_v44 = vld [vmem:[%s1903_s5 + $0x8] sm:$0xff] }
0x10e6   :  { %1393 = vrcp.f32 %v1005_v51  ;;  %v1017_v63 = vand.u32 2147483648, %v1005_v51  ;;  %vm1011_vm3 = vweird.f32 %v1005_v51  ;;  %v1015_v3 = vand.u32 2147483647, %v1005_v51 }
0x10e7   :  { %v1049_v49 = vmul.f32 %v1390_v31, %v1048_v46  ;;  %v1149_v46 = vld [vmem:[%s1903_s5] sm:$0xff] }
0x10e8   :  { %v1018_v0 = vor.u32 1.1754944e-38, %v1017_v63  ;;  %vm1016_vm5 = vcmp.eq.f32.partialorder %v1015_v3, 8.507059e+37 }
0x10e9   :  { %v1050_v52 = vadd.f32 %v1390_v31, %v1049_v49 }
0x10eb   :  { %v1054_v55 = vsel %vm1053_vm0, %v1390_v31, %v1050_v52  ;;  %v1152_v31 = vld [vmem:[%s1903_s5 + $0x18] sm:$0xff] }
0x10ec   :  { %v1059_v60 = vsel %vm1056_vm1, %v1058_v56, %v1054_v55  ;;  %v1394_v35 = vpop.eup %1393  ;;  %1174 = vmatpush.msra.mxu1 %v1152_v31 }
0x10ed   :  { %v1007_v48 = vmul.f32 %v1394_v35, %v1005_v51  ;;  %vm1012_vm2 = vweird.f32 %v1394_v35  ;;  %v1062_v39 = vmul.f32 %v1059_v60, %v1833_v12  ;;  %v1184_v51 = vld [vmem:[%s1905_s7 + $0x8] sm:$0xff]  ;;  %s1222_s7 = sshll.u32 %s1907_s9, 4  ;;  %s1223_s7 = int_to_ptr.hbm [resolvable:$true] %s1222_s7 }
0x10ee   :  { %vm1013_vm4 = vmor %vm1011_vm3, %vm1012_vm2  ;;  %1175 = vmatpush.msra.mxu1 %v1151_v43  ;;  %1207 = vmatpush.msra.mxu2 %v1184_v51 }
0x10ef   :  { %v1008_v59 = vsub.f32 1.0, %v1007_v48 }
0x10f0   :  { %1176 = vmatpush.msra.mxu1 %v1150_v44  ;;  %1208 = vmatpush.msra.mxu2 %v1183_v53 }
0x10f1   :  { %v1009_v62 = vmul.f32 %v1394_v35, %v1008_v59 }
0x10f2   :  { %1177 = vmatpush.msra.mxu1 %v1149_v46 }
0x10f3   :  { %v1010_v54 = vadd.f32 %v1394_v35, %v1009_v62 }
0x10f5   :  { %v1014_v4 = vsel %vm1013_vm4, %v1394_v35, %v1010_v54 }
0x10f6   :  { %v1019_v37 = vsel %vm1016_vm5, %v1018_v0, %v1014_v4 }
0x10f7   :  { %v1022_v45 = vmul.f32 %v1019_v37, %v1835_v14 }
0x1132   :  { %v1065_v58 = vpop.permute.xlu2 %1064 }
0x1133   :  { %v1067_v61 = vmul.f32 %v1065_v58, %v1059_v60 }
0x1135   :  { %1069 = vrot.lane.b32.xlu1 %v1067_v61, %s1465_s2 }
0x114b   :  { %v1025_v36 = vpop.permute.xlu1 %1024 }
0x114c   :  { %v1027_v38 = vmul.f32 %v1025_v36, %v1019_v37 }
0x114e   :  { %1029 = vrot.lane.b32.xlu0 %v1027_v38, %s1465_s2 }
0x11a7   :  { %v1070_v40 = vpop.permute.xlu1 %1069 }
0x11a8   :  { %v1072_v41 = vadd.f32 %v1070_v40, %v1062_v39 }
0x11aa   :  { %1395 = vtanh.f32 %v1072_v41 }
0x11b0   :  { %v1396_v42 = vpop.eup %1395 }
0x11b1   :  { %1075 = vrot.lane.b32.xlu0 %v1396_v42, %s1464_s20 }
0x11c0   :  { %v1030_v11 = vpop.permute.xlu0 %1029 }
0x11c1   :  { %v1032_v57 = vadd.f32 %v1030_v11, %v1022_v45 }
0x11c3   :  { %1397 = vtanh.f32 %v1032_v57 }
0x11c9   :  { %v1398_v1 = vpop.eup %1397 }
0x11ca   :  { %1035 = vrot.lane.b32.xlu2 %v1398_v1, %s1464_s20 }
0x1223   :  { %v1076_v2 = vpop.permute.xlu0 %1075 }
0x1224   :  { %v1036_v5 = vpop.permute.xlu2 %1035  ;;  %v1078_v6 = vmul.f32 %v1076_v2, %v1059_v60  ;;  %v1278_v60 = vld [vmem:[%s1906_s8] ss:$0 sm:$0xff] }
0x1225   :  { %v1038_v7 = vmul.f32 %v1036_v5, %v1019_v37 }
0x1226   :  { %1080 = vrot.lane.b32.xlu1 %v1078_v6, %s1465_s2 }
0x1227   :  { %1084 = vrot.lane.b32.xlu2 %v1038_v7, %s1464_s20 }
0x1281   :  { %v1085_v10 = vpop.permute.xlu2 %1084 }
0x1298   :  { %v1081_v8 = vpop.permute.xlu1 %1080 }
0x1299   :  { %v1087_v9 = vsel %vm176_vm6, %v1081_v8, %v1085_v10 }
0x129a   :  { %1264 = vmatmul.msk.f32.vlgmr.msra.gmra.mxu0 %vm110_vm7, %v1087_v9 }
0x1317   :  { %v1108_v12 = vpop.f32.mrf.mxu0 }
0x1318   :  { %v1111_v14 = vadd.f32 %v1850_v27, %v1108_v12 }
0x131a   :  { %1399 = vtanh.f32 %v1111_v14  ;;  %v1265_v15 = vmul.f32 -1.442695, %v1111_v14 }
0x131c   :  { %1401 = vpow2.f32 %v1265_v15 }
0x1320   :  { %v1400_v13 = vpop.eup %1399 }
0x1321   :  { %1134 = vrot.lane.b32.xlu0 %v1400_v13, %s1464_s20 }
0x1322   :  { %v1402_v16 = vpop.eup %1401 }
0x1323   :  { %v1115_v17 = vadd.f32 1.0, %v1402_v16 }
0x1325   :  { %1403 = vrcp.f32 %v1115_v17  ;;  %v1127_v23 = vand.u32 2147483648, %v1115_v17  ;;  %vm1121_vm7 = vweird.f32 %v1115_v17  ;;  %v1125_v24 = vand.u32 2147483647, %v1115_v17 }
0x1327   :  { %v1128_v26 = vor.u32 1.1754944e-38, %v1127_v23  ;;  %vm1126_vm10 = vcmp.eq.f32.partialorder %v1125_v24, 8.507059e+37 }
0x132b   :  { %v1404_v18 = vpop.eup %1403 }
0x132c   :  { %v1117_v19 = vmul.f32 %v1404_v18, %v1115_v17  ;;  %vm1122_vm8 = vweird.f32 %v1404_v18 }
0x132d   :  { %vm1123_vm9 = vmor %vm1121_vm7, %vm1122_vm8 }
0x132e   :  { %v1118_v20 = vsub.f32 1.0, %v1117_v19 }
0x1330   :  { %v1119_v21 = vmul.f32 %v1404_v18, %v1118_v20 }
0x1332   :  { %v1120_v22 = vadd.f32 %v1404_v18, %v1119_v21 }
0x1334   :  { %v1124_v25 = vsel %vm1123_vm9, %v1404_v18, %v1120_v22 }
0x1335   :  { %v1129_v28 = vsel %vm1126_vm10, %v1128_v26, %v1124_v25 }
0x1336   :  { %v1132_v30 = vmul.f32 %v1129_v28, %v1032_v57 }
0x1393   :  { %v1135_v27 = vpop.permute.xlu0 %1134 }
0x1394   :  { %v1137_v29 = vmul.f32 %v1135_v27, %v1129_v28 }
0x1396   :  { %1139 = vrot.lane.b32.xlu1 %v1137_v29, %s1465_s2 }
0x1408   :  { %v1140_v32 = vpop.permute.xlu1 %1139 }
0x1409   :  { %v1142_v47 = vadd.f32 %v1140_v32, %v1132_v30 }
0x140b   :  { %1405 = vtanh.f32 %v1142_v47 }
0x1411   :  { %v1406_v33 = vpop.eup %1405 }
0x1412   :  { %1145 = vrot.lane.b32.xlu2 %v1406_v33, %s1464_s20 }
0x146c   :  { %v1146_v49 = vpop.permute.xlu2 %1145 }
0x146d   :  { %v1148_v50 = vmul.f32 %v1146_v49, %v1129_v28 }
0x146f   :  { %1158 = vrot.lane.b32.xlu0 %v1148_v50, %s1465_s2 }
0x14e1   :  { %v1159_v52 = vpop.permute.xlu0 %1158 }
0x14e2   :  { %1266 = vmatmul.msk.f32.vlgmr.msra.gmra.mxu1 %vm176_vm6, %v1159_v52  ;;  %vm1213_vm6 = vcmask 25600  }
0x155f   :  { %v1179_v55 = vpop.f32.mrf.mxu1 }
0x1560   :  { %v1180_v56 = vadd.f32 %v1277_v34, %v1179_v55 }
0x1562   :  { %v1182_v58 = vmax.f32 %v1180_v56, 0.0 }
0x1564   :  { %1267 = vmatmul.msk.f32.vlgmr.msra.gmra.mxu2 %vm1189_vm11, %v1182_v58 }
0x15e7   :  { %v1210_v61 = vpop.f32.mrf.mxu2 }
0x15e8   :  { %v1211_v35 = vadd.f32 %v1278_v60, %v1210_v61 }
0x15ea   :  { %1214 = vst.msk [vmem:[#allocation5] sm:$0x3] %vm1213_vm6, %v1211_v35 }
0x15eb   :  { %1225 = dma.vmem_to_hbm [thread:$0]  %s1221_s1, 32, %s1223_s7, [#allocation4]  }
0x15ec   :  { %1458 = dma.done.wait [#allocation4], 32  }
0x15ed   :  { %1459 = vsyncadd [#allocation4], 4294967264 }
0x15ee   :  { %1230 = vsyncpa [#allocation3], 1 }
0x15ef   :  { %1231 = vsyncpa [#allocation4], 1 }

</bundles_post_ra>
